<compile_context>
chip_gen: v7x
topology: tpu7x:2x2x1
jax: 0.10.0
libtpu: 0.0.40
codegen_flags: <defaults>
</compile_context>

<pallas_src>
import functools
import math

import jax
import jax.numpy as jnp
from jax.experimental import pallas as pl
from jax.experimental.pallas import tpu as pltpu

LANE = 128  # TPU vreg lane width


def _round_up(x, m):
    return (x + m - 1) // m * m


# ----------------------------------------------------------------------------
# Pallas kernel 1: fused matmul + bias + ReLU (conv1 / conv2 im2col GEMMs)
# ----------------------------------------------------------------------------
def _matmul_bias_relu_kernel(x_ref, w_ref, b_ref, o_ref):
    x = x_ref[...]
    if x.dtype != jnp.bfloat16:
        # conv1 path: uint8 im2col widened in-kernel (exact for 0..255); the /255
        # scale lives in the packed bf16 conv1 weights.
        x = x.astype(jnp.float32).astype(jnp.bfloat16)
    acc = jnp.dot(x, w_ref[...], preferred_element_type=jnp.float32)
    o_ref[...] = jnp.maximum(acc + b_ref[...], 0.0).astype(o_ref.dtype)


def _choose_tile_m(M, tile_m):
    """Pick an M tile that (a) is a multiple of 32 sublanes (safe for uint8/bf16/f32
    blocks) and (b) exposes >=2 grid blocks whenever M is big enough, so a
    'parallel' grid can shard across both v7x TensorCores."""
    if M >= 2 * tile_m:
        return tile_m
    if M >= 64:
        return _round_up(pl.cdiv(M, 2), 32)
    return M  # tiny problem: one full-array block


def pallas_matmul_bias_relu(x, w, b2d, *, out_dtype=jnp.bfloat16, tile_m=1024):
    """x: (M, K) uint8/bf16, w: (K, N) bf16 (N multiple of 128), b2d: (1, N) f32."""
    M, K = x.shape
    N = w.shape[1]
    tm = _choose_tile_m(M, tile_m)
    grid = (pl.cdiv(M, tm),)
    # NOTE: when M % tm != 0 the trailing block's input DMA is clamped at the array
    # edge and the corresponding (garbage) output rows are dropped by the output
    # DMA; nothing feeds an accumulator, so results are unaffected.
    return pl.pallas_call(
        _matmul_bias_relu_kernel,
        out_shape=jax.ShapeDtypeStruct((M, N), out_dtype),
        grid=grid,
        in_specs=[pl.BlockSpec((tm, K), lambda i: (i, 0)),
                  pl.BlockSpec((K, N), lambda i: (0, 0)),
                  pl.BlockSpec((1, N), lambda i: (0, 0))],
        out_specs=pl.BlockSpec((tm, N), lambda i: (i, 0)),
        compiler_params=pltpu.CompilerParams(
            dimension_semantics=("parallel",),
            vmem_limit_bytes=32 * 1024 * 1024),  # explicit so v5e (16 MiB default) matches
    )(x, w, b2d)


# ----------------------------------------------------------------------------
# Pallas kernel 2: fused conv3 (1x1 spatial) + FC-512 + IQN head
# ----------------------------------------------------------------------------
def _iqn_tail_kernel(col3_ref, tau_ref, avg_ref,
                     c3w_ref, c3b_ref, fcw_ref, fcb_ref,
                     ew_ref, eb_ref, hw_ref, hb_ref,
                     qdist_ref, qvals_ref, *, num_taus):
    T = num_taus

    # conv3 (the backbone is at 1x1 spatial here): h3 = relu(col3 @ c3w + c3b) -> (tb, 128)
    h3 = jnp.dot(col3_ref[...], c3w_ref[...], preferred_element_type=jnp.float32)
    h3 = jnp.maximum(h3 + c3b_ref[...], 0.0)

    # FC-512 backbone head: feats = relu(h3 @ fcw + fcb) -> (tb, F)
    feats = jnp.dot(h3.astype(jnp.bfloat16), fcw_ref[...],
                    preferred_element_type=jnp.float32)
    feats = jnp.maximum(feats + fcb_ref[...], 0.0)
    tb, F = feats.shape

    # cos tau-embedding: taus arrive pre-multiplied by pi*i (lane-dense (tb*T, Lpad));
    # padded lanes hold 0 -> cos = 1 -> hit zero rows of ew -> no contribution.
    tau_emb = jnp.cos(tau_ref[...]).astype(jnp.bfloat16)
    emb = jnp.dot(tau_emb, ew_ref[...], preferred_element_type=jnp.float32)
    emb = jnp.maximum(emb + eb_ref[...], 0.0)                         # (tb*T, F)

    # gate with the state features (each batch row repeated over T taus)
    feats_rep = jnp.broadcast_to(feats[:, None, :], (tb, T, F)).reshape(tb * T, F)
    head_in = (emb * feats_rep).astype(jnp.bfloat16)

    # value head; 2-D lane-dense store (Apad = 128)
    qd = jnp.dot(head_in, hw_ref[...], preferred_element_type=jnp.float32) + hb_ref[...]
    qdist_ref[...] = qd
    # mean over taus via a tiny block-diagonal averaging matmul (MXU) — avoids a
    # 3-D reshape + middle-axis XLU reduce.
    qvals_ref[...] = jnp.dot(avg_ref[...], qd, preferred_element_type=jnp.float32)


def pallas_iqn_tail(col3, tau_arg, packed, *, num_taus, batch_tile=8):
    B, K3 = col3.shape
    T = num_taus
    Lpad = tau_arg.shape[1]
    Apad = packed['hw'].shape[1]
    # Batch-tiled grid: multiple-of-8 tiles once the batch is big enough (bounds the
    # VMEM/vreg working set at training batch sizes and lets dual-TC chips shard);
    # otherwise a single full-array block (safe for tiny B like 2).
    tb = batch_tile if (B > batch_tile and B % batch_tile == 0) else B
    grid = (B // tb,)
    # block-diagonal tau-averaging matrix: avg[i, i*T + t] = 1/T
    avg = jnp.repeat(jnp.eye(tb, dtype=jnp.float32), T, axis=1) / T   # (tb, tb*T)

    def full(a):
        return pl.BlockSpec(a.shape, lambda i: (0, 0))

    return pl.pallas_call(
        functools.partial(_iqn_tail_kernel, num_taus=T),
        out_shape=(jax.ShapeDtypeStruct((B * T, Apad), jnp.float32),
                   jax.ShapeDtypeStruct((B, Apad), jnp.float32)),
        grid=grid,
        in_specs=[pl.BlockSpec((tb, K3), lambda i: (i, 0)),
                  pl.BlockSpec((tb * T, Lpad), lambda i: (i, 0)),
                  full(avg),
                  full(packed['c3w']), full(packed['c3b']),
                  full(packed['fcw']), full(packed['fcb']),
                  full(packed['ew']), full(packed['eb']),
                  full(packed['hw']), full(packed['hb'])],
        out_specs=(pl.BlockSpec((tb * T, Apad), lambda i: (i, 0)),
                   pl.BlockSpec((tb, Apad), lambda i: (i, 0))),
        compiler_params=pltpu.CompilerParams(dimension_semantics=("parallel",)),
    )(col3, tau_arg, avg, packed['c3w'], packed['c3b'], packed['fcw'], packed['fcb'],
      packed['ew'], packed['eb'], packed['hw'], packed['hb'])


# ----------------------------------------------------------------------------
# NHWC patch extraction (plain-JAX glue; fuses with channel slice / dtype in XLA)
# ----------------------------------------------------------------------------
def _extract_patches_nhwc(x, k, s):
    """x: (B, H, W, C) -> ((B*OH*OW, k*k*C), OH, OW); feature order (kh, kw, C)."""
    B, H, W, C = x.shape
    OH = (H - k) // s + 1
    OW = (W - k) // s + 1
    cols = [x[:, i:i + (OH - 1) * s + 1:s, j:j + (OW - 1) * s + 1:s, :]
            for i in range(k) for j in range(k)]
    col = jnp.concatenate(cols, axis=-1)            # (B, OH, OW, k*k*C)
    return col.reshape(B * OH * OW, k * k * C), OH, OW


# ----------------------------------------------------------------------------
# Parameters
# ----------------------------------------------------------------------------
def init_params(key, in_channels, conv_out_dim, latent_dim, num_actions, hidden=512):
    ks = jax.random.split(key, 6)

    def w(k, shape, fan_in):
        return jax.random.normal(k, shape, jnp.float32) / jnp.sqrt(float(fan_in))

    return dict(
        c1w=w(ks[0], (32, in_channels, 8, 8), in_channels * 64),
        c1b=0.01 * jnp.ones((32,), jnp.float32),
        c2w=w(ks[1], (64, 32, 4, 4), 32 * 16),
        c2b=0.01 * jnp.ones((64,), jnp.float32),
        c3w=w(ks[2], (64, 64, 3, 3), 64 * 9),
        c3b=0.01 * jnp.ones((64,), jnp.float32),
        fcw=w(ks[3], (conv_out_dim, hidden), conv_out_dim),
        fcb=0.01 * jnp.ones((hidden,), jnp.float32),
        ew=w(ks[4], (latent_dim, hidden), latent_dim),
        eb=0.01 * jnp.ones((hidden,), jnp.float32),
        hw=w(ks[5], (hidden, num_actions), hidden),
        hb=jnp.zeros((num_actions,), jnp.float32),
    )


def pack_params(p, latent_dim):
    """Pre-pack weights for the Pallas kernels: (kh, kw, C) patch order with the REAL
    input channel count (no zero rows in the contraction dim), output channels
    zero-padded to the 128-lane width (unmasked stores), bf16 matmul operands,
    f32 biases, and the /255 input scale folded into conv1."""
    def pack_conv(w, b, scale=1.0):
        O, C, kh, kw = w.shape
        opad = _round_up(O, LANE)
        wt = (w.astype(jnp.float32) * scale).transpose(2, 3, 1, 0)   # (kh, kw, C, O)
        wp = jnp.zeros((kh, kw, C, opad), jnp.float32).at[..., :O].set(wt)
        bp = jnp.zeros((1, opad), jnp.float32).at[0, :O].set(b)
        return wp.reshape(kh * kw * C, opad).astype(jnp.bfloat16), bp

    def pack_linear(w, b, kin_pad, nout_pad):
        K, N = w.shape
        wp = jnp.zeros((kin_pad, nout_pad), jnp.float32).at[:K, :N].set(w)
        bp = jnp.zeros((1, nout_pad), jnp.float32).at[0, :N].set(b)
        return wp.astype(jnp.bfloat16), bp

    hidden = p['fcw'].shape[1]                       # 512 (multiple of 128)
    c1w, c1b = pack_conv(p['c1w'], p['c1b'], scale=1.0 / 255.0)   # K = 8*8*Cin
    c2w, c2b = pack_conv(p['c2w'], p['c2b'])                      # K = 4*4*32 = 512
    c3w, c3b = pack_conv(p['c3w'], p['c3b'])                      # K = 3*3*64 = 576
    # conv3's 128-lane padded output feeds fcw directly inside the fused tail kernel
    # (the stack ends at 1x1 spatial), so fcw's contraction dim is padded to 128 with
    # zero rows for channels 64..127.
    fcw, fcb = pack_linear(p['fcw'], p['fcb'], kin_pad=LANE, nout_pad=hidden)
    ew, eb = pack_linear(p['ew'], p['eb'],
                         kin_pad=_round_up(latent_dim, LANE), nout_pad=hidden)
    hw, hb = pack_linear(p['hw'], p['hb'],
                         kin_pad=hidden, nout_pad=_round_up(p['hw'].shape[1], LANE))
    pis = jnp.zeros((_round_up(latent_dim, LANE),), jnp.float32).at[:latent_dim].set(
        jnp.arange(1, latent_dim + 1, dtype=jnp.float32) * jnp.float32(math.pi))
    return dict(c1w=c1w, c1b=c1b, c2w=c2w, c2b=c2b, c3w=c3w, c3b=c3b,
                fcw=fcw, fcb=fcb, ew=ew, eb=eb, hw=hw, hb=hb, pis=pis)


# ----------------------------------------------------------------------------
# IqnConvNet forward
# ----------------------------------------------------------------------------
def iqn_forward(packed, x, tau_key, *, num_taus, num_actions):
    """x: uint8 NCHW (PyTorch convention). Returns (q_values, q_dist, taus)."""
    B = x.shape[0]
    x = jnp.transpose(x, (0, 2, 3, 1))   # one cheap uint8 NCHW->NHWC; NHWC from here on

    # conv1 8x8/4: im2col stays uint8 (half the HBM traffic of bf16); widened in-kernel.
    # TODO(synk): extract patches inside the kernel (manual DMA over overlapping input
    # row bands) to avoid materializing the im2col matrix in HBM at all.
    col, oh, ow = _extract_patches_nhwc(x, 8, 4)
    h = pallas_matmul_bias_relu(col, packed['c1w'], packed['c1b']).reshape(B, oh, ow, LANE)

    # conv2 4x4/2: slice the 32 real channels before patch extraction (fuses with the
    # strided-slice+concat) so K = 512, not 2048 zero rows the MXU cannot skip.
    col, oh, ow = _extract_patches_nhwc(h[..., :32], 4, 2)
    h = pallas_matmul_bias_relu(col, packed['c2w'], packed['c2b']).reshape(B, oh, ow, LANE)

    # conv3 3x3/1 collapses to 1x1 spatial for this backbone; it is fused with the
    # FC-512 backbone + IQN head into a single pallas_call below (K = 576 real).
    col3, oh, ow = _extract_patches_nhwc(h[..., :64], 3, 1)
    assert oh == 1 and ow == 1, (
        "fused conv3+IQN tail assumes the Nature-CNN stack ends at 1x1 spatial; "
        f"got {oh}x{ow} output (use an input H/W that maps 36->8->3->1)")

    # tau sampling (torch.rand equivalent; deterministic via PRNGKey here)
    taus = jax.random.uniform(tau_key, (B, num_taus), dtype=jnp.float32)
    # pre-broadcast tau * (pi*i) so the kernel sees a lane-dense (B*T, 128) block
    tau_arg = (taus[:, :, None] * packed['pis'][None, None, :]).reshape(B * num_taus, -1)

    q_dist_pad, q_vals_pad = pallas_iqn_tail(col3, tau_arg, packed, num_taus=num_taus)
    q_dist = q_dist_pad.reshape(B, num_taus, -1)[:, :, :num_actions]
    return q_vals_pad[:, :num_actions], q_dist, taus


# ----------------------------------------------------------------------------
# Pure-JAX reference (for correctness checking only)
# ----------------------------------------------------------------------------
def ref_forward(params, x, taus, latent_dim):
    x = x.astype(jnp.float32) / 255.0

    def conv(h, w, b, s):
        y = jax.lax.conv_general_dilated(h, w, (s, s), 'VALID',
                                         dimension_numbers=('NCHW', 'OIHW', 'NCHW'))
        return jax.nn.relu(y + b[None, :, None, None])

    h = conv(x, params['c1w'], params['c1b'], 4)
    h = conv(h, params['c2w'], params['c2b'], 2)
    h = conv(h, params['c3w'], params['c3b'], 1)
    B = x.shape[0]
    flat = jnp.transpose(h, (0, 2, 3, 1)).reshape(B, -1)   # NHWC flatten (1x1 spatial)
    feats = jax.nn.relu(flat @ params['fcw'] + params['fcb'])

    T = taus.shape[1]
    pis = jnp.arange(1, latent_dim + 1, dtype=jnp.float32) * jnp.float32(math.pi)
    te = jnp.cos(pis[None, None, :] * taus[:, :, None]).reshape(B * T, -1)
    emb = jax.nn.relu(te @ params['ew'] + params['eb']).reshape(B, T, -1)
    head_in = (emb * feats[:, None, :]).reshape(B * T, -1)
    qd = (head_in @ params['hw'] + params['hb']).reshape(B, T, -1)
    return qd.mean(axis=1), qd


if __name__ == "__main__":
    # Small config: input (C=4, H=36, W=36) so the Nature CNN is valid (36 -> 8 -> 3 -> 1),
    # num_actions=6, latent_dim=64, num_taus=8, batch=2.
    B, C, H, W = 2, 4, 36, 36
    NUM_ACTIONS, LATENT_DIM, NUM_TAUS = 6, 64, 8
    CONV_OUT = 64 * 1 * 1   # 64 channels x 1 x 1 after the conv stack

    root = jax.random.PRNGKey(0)
    k_param, k_x, k_tau = jax.random.split(root, 3)

    raw_params = init_params(k_param, C, CONV_OUT, LATENT_DIM, NUM_ACTIONS)
    packed = pack_params(raw_params, LATENT_DIM)
    x = jax.random.randint(k_x, (B, C, H, W), 0, 256, dtype=jnp.int32).astype(jnp.uint8)

    fwd = jax.jit(functools.partial(iqn_forward, num_taus=NUM_TAUS,
                                    num_actions=NUM_ACTIONS))
    q_values, q_dist, taus = fwd(packed, x, k_tau)
    jax.block_until_ready((q_values, q_dist, taus))

    assert q_values.shape == (B, NUM_ACTIONS)
    assert q_dist.shape == (B, NUM_TAUS, NUM_ACTIONS)
    assert taus.shape == (B, NUM_TAUS)

    # correctness check against the plain-JAX f32 reference (same taus); tolerance
    # accounts for bf16 MXU operands with f32 accumulation and the /255 weight fold.
    qv_ref, qd_ref = ref_forward(raw_params, x, taus, LATENT_DIM)
    assert jnp.allclose(q_values, qv_ref, atol=5e-2, rtol=5e-2), \
        float(jnp.max(jnp.abs(q_values - qv_ref)))
    assert jnp.allclose(q_dist, qd_ref, atol=5e-2, rtol=5e-2), \
        float(jnp.max(jnp.abs(q_dist - qd_ref)))

    print("KERNEL_OK")
</pallas_src>

<mosaic_0001>
module attributes {stable_mosaic.version = 11 : i64} {
  func.func @_matmul_bias_relu_kernel(%arg0: i32, %arg1: memref<64x256xi8, #tpu.memory_space<vmem>>, %arg2: memref<256x128xbf16, #tpu.memory_space<vmem>>, %arg3: memref<1x128xf32, #tpu.memory_space<vmem>>, %arg4: memref<64x128xbf16, #tpu.memory_space<vmem>>) attributes {dimension_semantics = [#tpu.dimension_semantics<parallel>], iteration_bounds = array<i64: 2>, scalar_prefetch = 0 : i64, scratch_operands = 0 : i64, tpu.core_type = #tpu.core_type<tc>, window_params = [{transform_indices = @transform_0, window_bounds = array<i64: 64, 256>}, {pipeline_mode = #tpu.pipeline_mode<synchronous>, transform_indices = @transform_1, window_bounds = array<i64: 256, 128>}, {pipeline_mode = #tpu.pipeline_mode<synchronous>, transform_indices = @transform_2, window_bounds = array<i64: 1, 128>}, {transform_indices = @transform_3, window_bounds = array<i64: 64, 128>}]} {
    %c0 = arith.constant 0 : index
    %c0_0 = arith.constant 0 : index
    %0 = vector.load %arg1[%c0, %c0_0] : memref<64x256xi8, #tpu.memory_space<vmem>>, vector<64x256xi8>
    %1 = arith.uitofp %0 : vector<64x256xi8> to vector<64x256xf32>
    %2 = arith.truncf %1 : vector<64x256xf32> to vector<64x256xbf16>
    %c0_1 = arith.constant 0 : index
    %c0_2 = arith.constant 0 : index
    %3 = vector.load %arg2[%c0_1, %c0_2] : memref<256x128xbf16, #tpu.memory_space<vmem>>, vector<256x128xbf16>
    %cst = arith.constant dense<0.000000e+00> : vector<64x128xf32>
    %4 = tpu.matmul %2, %3, %cst {dimension_numbers = #tpu.dot_dimension_numbers<[1], [0], [0], [1], [0, 0, 1, 1], [], []>} : vector<64x256xbf16>, vector<256x128xbf16>, vector<64x128xf32> -> vector<64x128xf32>
    %c0_3 = arith.constant 0 : index
    %c0_4 = arith.constant 0 : index
    %5 = vector.load %arg3[%c0_3, %c0_4] : memref<1x128xf32, #tpu.memory_space<vmem>>, vector<1x128xf32>
    %6 = vector.broadcast %5 : vector<1x128xf32> to vector<64x128xf32>
    %7 = arith.addf %4, %6 : vector<64x128xf32>
    %cst_5 = arith.constant 0.000000e+00 : f32
    %8 = vector.broadcast %cst_5 : f32 to vector<64x128xf32>
    %9 = arith.maximumf %7, %8 : vector<64x128xf32>
    %10 = arith.truncf %9 : vector<64x128xf32> to vector<64x128xbf16>
    %c0_6 = arith.constant 0 : index
    %c0_7 = arith.constant 0 : index
    %11 = vector.load %arg4[%c0_6, %c0_7] : memref<64x128xbf16, #tpu.memory_space<vmem>>, vector<64x128xbf16>
    tpu.vector_store %arg4[%c0_6, %c0_7], %10 {strides = array<i32>} : memref<64x128xbf16, #tpu.memory_space<vmem>>, vector<64x128xbf16>,
    return
  }
  func.func @transform_0(%arg0: i32) -> (i32, i32) {
    %c0_i32 = arith.constant 0 : i32
    %c0_i32_0 = arith.constant 0 : i32
    return %arg0, %c0_i32 : i32, i32
  }
  func.func @transform_1(%arg0: i32) -> (i32, i32) {
    %c0_i32 = arith.constant 0 : i32
    %c0_i32_0 = arith.constant 0 : i32
    %c0_i32_1 = arith.constant 0 : i32
    return %c0_i32, %c0_i32_0 : i32, i32
  }
  func.func @transform_2(%arg0: i32) -> (i32, i32) {
    %c0_i32 = arith.constant 0 : i32
    %c0_i32_0 = arith.constant 0 : i32
    %c0_i32_1 = arith.constant 0 : i32
    return %c0_i32, %c0_i32_0 : i32, i32
  }
  func.func @transform_3(%arg0: i32) -> (i32, i32) {
    %c0_i32 = arith.constant 0 : i32
    %c0_i32_0 = arith.constant 0 : i32
    return %arg0, %c0_i32 : i32, i32
  }
}

module attributes {stable_mosaic.version = 11 : i64} {
  func.func @_matmul_bias_relu_kernel(%arg0: i32, %arg1: memref<18x512xbf16, #tpu.memory_space<vmem>>, %arg2: memref<512x128xbf16, #tpu.memory_space<vmem>>, %arg3: memref<1x128xf32, #tpu.memory_space<vmem>>, %arg4: memref<18x128xbf16, #tpu.memory_space<vmem>>) attributes {dimension_semantics = [#tpu.dimension_semantics<parallel>], iteration_bounds = array<i64: 1>, scalar_prefetch = 0 : i64, scratch_operands = 0 : i64, tpu.core_type = #tpu.core_type<tc>, window_params = [{transform_indices = @transform_0, window_bounds = array<i64: 18, 512>}, {pipeline_mode = #tpu.pipeline_mode<synchronous>, transform_indices = @transform_1, window_bounds = array<i64: 512, 128>}, {pipeline_mode = #tpu.pipeline_mode<synchronous>, transform_indices = @transform_2, window_bounds = array<i64: 1, 128>}, {transform_indices = @transform_3, window_bounds = array<i64: 18, 128>}]} {
    %c0 = arith.constant 0 : index
    %c0_0 = arith.constant 0 : index
    %0 = vector.load %arg1[%c0, %c0_0] : memref<18x512xbf16, #tpu.memory_space<vmem>>, vector<18x512xbf16>
    %c0_1 = arith.constant 0 : index
    %c0_2 = arith.constant 0 : index
    %1 = vector.load %arg2[%c0_1, %c0_2] : memref<512x128xbf16, #tpu.memory_space<vmem>>, vector<512x128xbf16>
    %cst = arith.constant dense<0.000000e+00> : vector<18x128xf32>
    %2 = tpu.matmul %0, %1, %cst {dimension_numbers = #tpu.dot_dimension_numbers<[1], [0], [0], [1], [0, 0, 1, 1], [], []>} : vector<18x512xbf16>, vector<512x128xbf16>, vector<18x128xf32> -> vector<18x128xf32>
    %c0_3 = arith.constant 0 : index
    %c0_4 = arith.constant 0 : index
    %3 = vector.load %arg3[%c0_3, %c0_4] : memref<1x128xf32, #tpu.memory_space<vmem>>, vector<1x128xf32>
    %4 = vector.broadcast %3 : vector<1x128xf32> to vector<18x128xf32>
    %5 = arith.addf %2, %4 : vector<18x128xf32>
    %cst_5 = arith.constant 0.000000e+00 : f32
    %6 = vector.broadcast %cst_5 : f32 to vector<18x128xf32>
    %7 = arith.maximumf %5, %6 : vector<18x128xf32>
    %8 = arith.truncf %7 : vector<18x128xf32> to vector<18x128xbf16>
    %c0_6 = arith.constant 0 : index
    %c0_7 = arith.constant 0 : index
    %9 = vector.load %arg4[%c0_6, %c0_7] : memref<18x128xbf16, #tpu.memory_space<vmem>>, vector<18x128xbf16>
    tpu.vector_store %arg4[%c0_6, %c0_7], %8 {strides = array<i32>} : memref<18x128xbf16, #tpu.memory_space<vmem>>, vector<18x128xbf16>,
    return
  }
  func.func @transform_0(%arg0: i32) -> (i32, i32) {
    %c0_i32 = arith.constant 0 : i32
    %c0_i32_0 = arith.constant 0 : i32
    return %arg0, %c0_i32 : i32, i32
  }
  func.func @transform_1(%arg0: i32) -> (i32, i32) {
    %c0_i32 = arith.constant 0 : i32
    %c0_i32_0 = arith.constant 0 : i32
    %c0_i32_1 = arith.constant 0 : i32
    return %c0_i32, %c0_i32_0 : i32, i32
  }
  func.func @transform_2(%arg0: i32) -> (i32, i32) {
    %c0_i32 = arith.constant 0 : i32
    %c0_i32_0 = arith.constant 0 : i32
    %c0_i32_1 = arith.constant 0 : i32
    return %c0_i32, %c0_i32_0 : i32, i32
  }
  func.func @transform_3(%arg0: i32) -> (i32, i32) {
    %c0_i32 = arith.constant 0 : i32
    %c0_i32_0 = arith.constant 0 : i32
    return %arg0, %c0_i32 : i32, i32
  }
}

module attributes {stable_mosaic.version = 11 : i64} {
  func.func @_iqn_tail_kernel(%arg0: i32, %arg1: memref<2x576xbf16, #tpu.memory_space<vmem>>, %arg2: memref<16x128xf32, #tpu.memory_space<vmem>>, %arg3: memref<2x16xf32, #tpu.memory_space<vmem>>, %arg4: memref<576x128xbf16, #tpu.memory_space<vmem>>, %arg5: memref<1x128xf32, #tpu.memory_space<vmem>>, %arg6: memref<128x512xbf16, #tpu.memory_space<vmem>>, %arg7: memref<1x512xf32, #tpu.memory_space<vmem>>, %arg8: memref<128x512xbf16, #tpu.memory_space<vmem>>, %arg9: memref<1x512xf32, #tpu.memory_space<vmem>>, %arg10: memref<512x128xbf16, #tpu.memory_space<vmem>>, %arg11: memref<1x128xf32, #tpu.memory_space<vmem>>, %arg12: memref<16x128xf32, #tpu.memory_space<vmem>>, %arg13: memref<2x128xf32, #tpu.memory_space<vmem>>) attributes {dimension_semantics = [#tpu.dimension_semantics<parallel>], iteration_bounds = array<i64: 1>, scalar_prefetch = 0 : i64, scratch_operands = 0 : i64, tpu.core_type = #tpu.core_type<tc>, window_params = [{transform_indices = @transform_0, window_bounds = array<i64: 2, 576>}, {transform_indices = @transform_1, window_bounds = array<i64: 16, 128>}, {pipeline_mode = #tpu.pipeline_mode<synchronous>, transform_indices = @transform_2, window_bounds = array<i64: 2, 16>}, {pipeline_mode = #tpu.pipeline_mode<synchronous>, transform_indices = @transform_3, window_bounds = array<i64: 576, 128>}, {pipeline_mode = #tpu.pipeline_mode<synchronous>, transform_indices = @transform_4, window_bounds = array<i64: 1, 128>}, {pipeline_mode = #tpu.pipeline_mode<synchronous>, transform_indices = @transform_5, window_bounds = array<i64: 128, 512>}, {pipeline_mode = #tpu.pipeline_mode<synchronous>, transform_indices = @transform_6, window_bounds = array<i64: 1, 512>}, {pipeline_mode = #tpu.pipeline_mode<synchronous>, transform_indices = @transform_7, window_bounds = array<i64: 128, 512>}, {pipeline_mode = #tpu.pipeline_mode<synchronous>, transform_indices = @transform_8, window_bounds = array<i64: 1, 512>}, {pipeline_mode = #tpu.pipeline_mode<synchronous>, transform_indices = @transform_9, window_bounds = array<i64: 512, 128>}, {pipeline_mode = #tpu.pipeline_mode<synchronous>, transform_indices = @transform_10, window_bounds = array<i64: 1, 128>}, {transform_indices = @transform_11, window_bounds = array<i64: 16, 128>}, {transform_indices = @transform_12, window_bounds = array<i64: 2, 128>}]} {
    %c0 = arith.constant 0 : index
    %c0_0 = arith.constant 0 : index
    %0 = vector.load %arg1[%c0, %c0_0] : memref<2x576xbf16, #tpu.memory_space<vmem>>, vector<2x576xbf16>
    %c0_1 = arith.constant 0 : index
    %c0_2 = arith.constant 0 : index
    %1 = vector.load %arg4[%c0_1, %c0_2] : memref<576x128xbf16, #tpu.memory_space<vmem>>, vector<576x128xbf16>
    %cst = arith.constant dense<0.000000e+00> : vector<2x128xf32>
    %2 = tpu.matmul %0, %1, %cst {dimension_numbers = #tpu.dot_dimension_numbers<[1], [0], [0], [1], [0, 0, 1, 1], [], []>} : vector<2x576xbf16>, vector<576x128xbf16>, vector<2x128xf32> -> vector<2x128xf32>
    %c0_3 = arith.constant 0 : index
    %c0_4 = arith.constant 0 : index
    %3 = vector.load %arg5[%c0_3, %c0_4] : memref<1x128xf32, #tpu.memory_space<vmem>>, vector<1x128xf32>
    %4 = vector.broadcast %3 : vector<1x128xf32> to vector<2x128xf32>
    %5 = arith.addf %2, %4 : vector<2x128xf32>
    %cst_5 = arith.constant 0.000000e+00 : f32
    %6 = vector.broadcast %cst_5 : f32 to vector<2x128xf32>
    %7 = arith.maximumf %5, %6 : vector<2x128xf32>
    %8 = arith.truncf %7 : vector<2x128xf32> to vector<2x128xbf16>
    %c0_6 = arith.constant 0 : index
    %c0_7 = arith.constant 0 : index
    %9 = vector.load %arg6[%c0_6, %c0_7] : memref<128x512xbf16, #tpu.memory_space<vmem>>, vector<128x512xbf16>
    %cst_8 = arith.constant dense<0.000000e+00> : vector<2x512xf32>
    %10 = tpu.matmul %8, %9, %cst_8 {dimension_numbers = #tpu.dot_dimension_numbers<[1], [0], [0], [1], [0, 0, 1, 1], [], []>} : vector<2x128xbf16>, vector<128x512xbf16>, vector<2x512xf32> -> vector<2x512xf32>
    %c0_9 = arith.constant 0 : index
    %c0_10 = arith.constant 0 : index
    %11 = vector.load %arg7[%c0_9, %c0_10] : memref<1x512xf32, #tpu.memory_space<vmem>>, vector<1x512xf32>
    %12 = vector.broadcast %11 : vector<1x512xf32> to vector<2x512xf32>
    %13 = arith.addf %10, %12 : vector<2x512xf32>
    %cst_11 = arith.constant 0.000000e+00 : f32
    %14 = vector.broadcast %cst_11 : f32 to vector<2x512xf32>
    %15 = arith.maximumf %13, %14 : vector<2x512xf32>
    %c0_12 = arith.constant 0 : index
    %c0_13 = arith.constant 0 : index
    %16 = vector.load %arg2[%c0_12, %c0_13] : memref<16x128xf32, #tpu.memory_space<vmem>>, vector<16x128xf32>
    %17 = math.cos %16 : vector<16x128xf32>
    %18 = arith.truncf %17 : vector<16x128xf32> to vector<16x128xbf16>
    %c0_14 = arith.constant 0 : index
    %c0_15 = arith.constant 0 : index
    %19 = vector.load %arg8[%c0_14, %c0_15] : memref<128x512xbf16, #tpu.memory_space<vmem>>, vector<128x512xbf16>
    %cst_16 = arith.constant dense<0.000000e+00> : vector<16x512xf32>
    %20 = tpu.matmul %18, %19, %cst_16 {dimension_numbers = #tpu.dot_dimension_numbers<[1], [0], [0], [1], [0, 0, 1, 1], [], []>} : vector<16x128xbf16>, vector<128x512xbf16>, vector<16x512xf32> -> vector<16x512xf32>
    %c0_17 = arith.constant 0 : index
    %c0_18 = arith.constant 0 : index
    %21 = vector.load %arg9[%c0_17, %c0_18] : memref<1x512xf32, #tpu.memory_space<vmem>>, vector<1x512xf32>
    %22 = vector.broadcast %21 : vector<1x512xf32> to vector<16x512xf32>
    %23 = arith.addf %20, %22 : vector<16x512xf32>
    %cst_19 = arith.constant 0.000000e+00 : f32
    %24 = vector.broadcast %cst_19 : f32 to vector<16x512xf32>
    %25 = arith.maximumf %23, %24 : vector<16x512xf32>
    %26 = vector.shape_cast %15 : vector<2x512xf32> to vector<2x1x512xf32>
    %27 = vector.shape_cast %26 : vector<2x1x512xf32> to vector<2x1x512xf32>
    %28 = vector.broadcast %27 : vector<2x1x512xf32> to vector<2x8x512xf32>
    %29 = vector.shape_cast %28 : vector<2x8x512xf32> to vector<16x512xf32>
    %30 = arith.mulf %25, %29 : vector<16x512xf32>
    %31 = arith.truncf %30 : vector<16x512xf32> to vector<16x512xbf16>
    %c0_20 = arith.constant 0 : index
    %c0_21 = arith.constant 0 : index
    %32 = vector.load %arg10[%c0_20, %c0_21] : memref<512x128xbf16, #tpu.memory_space<vmem>>, vector<512x128xbf16>
    %cst_22 = arith.constant dense<0.000000e+00> : vector<16x128xf32>
    %33 = tpu.matmul %31, %32, %cst_22 {dimension_numbers = #tpu.dot_dimension_numbers<[1], [0], [0], [1], [0, 0, 1, 1], [], []>} : vector<16x512xbf16>, vector<512x128xbf16>, vector<16x128xf32> -> vector<16x128xf32>
    %c0_23 = arith.constant 0 : index
    %c0_24 = arith.constant 0 : index
    %34 = vector.load %arg11[%c0_23, %c0_24] : memref<1x128xf32, #tpu.memory_space<vmem>>, vector<1x128xf32>
    %35 = vector.broadcast %34 : vector<1x128xf32> to vector<16x128xf32>
    %36 = arith.addf %33, %35 : vector<16x128xf32>
    %c0_25 = arith.constant 0 : index
    %c0_26 = arith.constant 0 : index
    %37 = vector.load %arg12[%c0_25, %c0_26] : memref<16x128xf32, #tpu.memory_space<vmem>>, vector<16x128xf32>
    tpu.vector_store %arg12[%c0_25, %c0_26], %36 {strides = array<i32>} : memref<16x128xf32, #tpu.memory_space<vmem>>, vector<16x128xf32>,
    %c0_27 = arith.constant 0 : index
    %c0_28 = arith.constant 0 : index
    %38 = vector.load %arg3[%c0_27, %c0_28] : memref<2x16xf32, #tpu.memory_space<vmem>>, vector<2x16xf32>
    %cst_29 = arith.constant dense<0.000000e+00> : vector<2x128xf32>
    %39 = tpu.matmul %38, %36, %cst_29 {dimension_numbers = #tpu.dot_dimension_numbers<[1], [0], [0], [1], [0, 0, 1, 1], [], []>} : vector<2x16xf32>, vector<16x128xf32>, vector<2x128xf32> -> vector<2x128xf32>
    %c0_30 = arith.constant 0 : index
    %c0_31 = arith.constant 0 : index
    %40 = vector.load %arg13[%c0_30, %c0_31] : memref<2x128xf32, #tpu.memory_space<vmem>>, vector<2x128xf32>
    tpu.vector_store %arg13[%c0_30, %c0_31], %39 {strides = array<i32>} : memref<2x128xf32, #tpu.memory_space<vmem>>, vector<2x128xf32>,
    return
  }
  func.func @transform_0(%arg0: i32) -> (i32, i32) {
    %c0_i32 = arith.constant 0 : i32
    %c0_i32_0 = arith.constant 0 : i32
    return %arg0, %c0_i32 : i32, i32
  }
  func.func @transform_1(%arg0: i32) -> (i32, i32) {
    %c0_i32 = arith.constant 0 : i32
    %c0_i32_0 = arith.constant 0 : i32
    return %arg0, %c0_i32 : i32, i32
  }
  func.func @transform_2(%arg0: i32) -> (i32, i32) {
    %c0_i32 = arith.constant 0 : i32
    %c0_i32_0 = arith.constant 0 : i32
    %c0_i32_1 = arith.constant 0 : i32
    return %c0_i32, %c0_i32_0 : i32, i32
  }
  func.func @transform_3(%arg0: i32) -> (i32, i32) {
    %c0_i32 = arith.constant 0 : i32
    %c0_i32_0 = arith.constant 0 : i32
    %c0_i32_1 = arith.constant 0 : i32
    return %c0_i32, %c0_i32_0 : i32, i32
  }
  func.func @transform_4(%arg0: i32) -> (i32, i32) {
    %c0_i32 = arith.constant 0 : i32
    %c0_i32_0 = arith.constant 0 : i32
    %c0_i32_1 = arith.constant 0 : i32
    return %c0_i32, %c0_i32_0 : i32, i32
  }
  func.func @transform_5(%arg0: i32) -> (i32, i32) {
    %c0_i32 = arith.constant 0 : i32
    %c0_i32_0 = arith.constant 0 : i32
    %c0_i32_1 = arith.constant 0 : i32
    return %c0_i32, %c0_i32_0 : i32, i32
  }
  func.func @transform_6(%arg0: i32) -> (i32, i32) {
    %c0_i32 = arith.constant 0 : i32
    %c0_i32_0 = arith.constant 0 : i32
    %c0_i32_1 = arith.constant 0 : i32
    return %c0_i32, %c0_i32_0 : i32, i32
  }
  func.func @transform_7(%arg0: i32) -> (i32, i32) {
    %c0_i32 = arith.constant 0 : i32
    %c0_i32_0 = arith.constant 0 : i32
    %c0_i32_1 = arith.constant 0 : i32
    return %c0_i32, %c0_i32_0 : i32, i32
  }
  func.func @transform_8(%arg0: i32) -> (i32, i32) {
    %c0_i32 = arith.constant 0 : i32
    %c0_i32_0 = arith.constant 0 : i32
    %c0_i32_1 = arith.constant 0 : i32
    return %c0_i32, %c0_i32_0 : i32, i32
  }
  func.func @transform_9(%arg0: i32) -> (i32, i32) {
    %c0_i32 = arith.constant 0 : i32
    %c0_i32_0 = arith.constant 0 : i32
    %c0_i32_1 = arith.constant 0 : i32
    return %c0_i32, %c0_i32_0 : i32, i32
  }
  func.func @transform_10(%arg0: i32) -> (i32, i32) {
    %c0_i32 = arith.constant 0 : i32
    %c0_i32_0 = arith.constant 0 : i32
    %c0_i32_1 = arith.constant 0 : i32
    return %c0_i32, %c0_i32_0 : i32, i32
  }
  func.func @transform_11(%arg0: i32) -> (i32, i32) {
    %c0_i32 = arith.constant 0 : i32
    %c0_i32_0 = arith.constant 0 : i32
    return %arg0, %c0_i32 : i32, i32
  }
  func.func @transform_12(%arg0: i32) -> (i32, i32) {
    %c0_i32 = arith.constant 0 : i32
    %c0_i32_0 = arith.constant 0 : i32
    return %arg0, %c0_i32 : i32, i32
  }
}

</mosaic_0001>

<bundles_post_ra>
// kernel: iqn_forward.3
= control target key start
LH: loop header
LB: loop body
LE: loop exit
PB: predicated region body
PF: predicated region fallthrough
CT: control target
= control target key end

     0   :  { %s723_s12 = smov 0   ;;  %s808_s0 = inlined_call_operand.vmem [shape: u8[128,256], index: 0, kind: input, shape index: {}]   ;;  %s809_s1 = inlined_call_operand.vmem [shape: bf16[256,128], index: 1, kind: input, shape index: {}]   ;;  %s810_s2 = inlined_call_operand.vmem [shape: f32[1,128], index: 2, kind: input, shape index: {}]   ;;  %s811_s3 = inlined_call_operand.vmem [shape: bf16[128,128], index: 3, kind: output, shape index: {}]  }
   0x1 LB: > { %s538_s13 = sadd.s32 4294967295, %s701_s12   ;;  %p542_p0 = scmp.ge.s32.totalorder %s701_s12, 1  ;;  %s701_s12 = sphi %s723_s12, %s13_s12  }
   0x2   : > { %p139_p1 = scmp.lt.s32.totalorder %s701_s12, 3 }
   0x4   : > { %p140_p2 = pnand %p542_p0, %p139_p1 }
   0x5   : > { %v679_v0 = vld [vmem:[%s809_s1 + $0x40] sm:$0xff] (!%p140_p2)   ;;  %s543_s16 = sshll.u32 (!%p140_p2), %s538_s13, 3  ;;  %v681_v2 = vld [vmem:[%s809_s1 + $0x48] sm:$0xff] (!%p140_p2)   ;;  %v683_v4 = vld [vmem:[%s809_s1 + $0x50] sm:$0xff] (!%p140_p2)  }
   0x6   : > { %143 = sbr.rel (%p140_p2) target bundleno = 271 (0x10f), region = 32  ;;  %v680_v1 = vld [vmem:[%s809_s1] sm:$0xff] (!%p140_p2)   ;;  %615 = vmatprep.subr.bf16.mxu0 (!%p140_p2), %v679_v0  ;;  %655 = vmatprep.subr.bf16.mxu1 (!%p140_p2), %v679_v0  ;;  %p165_p3 = scmp.lt.s32.totalorder (!%p140_p2), %s543_s16, 15  ;;  %v682_v3 = vld [vmem:[%s809_s1 + $0x8] sm:$0xff] (!%p140_p2)   ;;  %v684_v5 = vld [vmem:[%s809_s1 + $0x10] sm:$0xff] (!%p140_p2)  }
   0x7   : > { %616 = vmatpush3.bf16.msra.mxu0 (!%p140_p2), %v680_v1  ;;  %663 = vmatpush3.bf16.msra.mxu1 (!%p140_p2), %v680_v1  ;;  %v685_v6 = vld [vmem:[%s809_s1 + $0x58] sm:$0xff] (!%p140_p2)   ;;  %v687_v8 = vld [vmem:[%s809_s1 + $0x60] sm:$0xff] (!%p140_p2)   ;;  %v689_v10 = vld [vmem:[%s809_s1 + $0x68] sm:$0xff] (!%p140_p2)  }
   0x8   : > { %617 = vmatprep.subr.bf16.mxu0 (!%p140_p2), %v681_v2  ;;  %656 = vmatprep.subr.bf16.mxu1 (!%p140_p2), %v681_v2  ;;  %v686_v7 = vld [vmem:[%s809_s1 + $0x18] sm:$0xff] (!%p140_p2)   ;;  %v688_v9 = vld [vmem:[%s809_s1 + $0x20] sm:$0xff] (!%p140_p2)   ;;  %v690_v19 = vld [vmem:[%s809_s1 + $0x28] sm:$0xff] (!%p140_p2)  }
   0x9   : > { %v691_v21 = vld [vmem:[%s809_s1 + $0x70] sm:$0xff] (!%p140_p2)   ;;  %v693_v24 = vld [vmem:[%s809_s1 + $0x78] sm:$0xff] (!%p140_p2)   ;;  %v548_v42 = vld [vmem:[%s810_s2] ss:$0 sm:$0xff] (!%p140_p2) }
   0xa   : > { %v692_v23 = vld [vmem:[%s809_s1 + $0x30] sm:$0xff] (!%p140_p2)   ;;  %v694_v29 = vld [vmem:[%s809_s1 + $0x38] sm:$0xff] (!%p140_p2)  }
   0xb   : > { %618 = vmatpush3.bf16.msra.mxu0 (!%p140_p2), %v682_v3  ;;  %664 = vmatpush3.bf16.msra.mxu1 (!%p140_p2), %v682_v3 }
   0xc   : > { %619 = vmatprep.subr.bf16.mxu0 (!%p140_p2), %v683_v4  ;;  %657 = vmatprep.subr.bf16.mxu1 (!%p140_p2), %v683_v4 }
   0xd   : > { %s813_s16 = smov (!%p165_p3, %s543_s16), 15 }
   0xe   : > { %s583_s29 = sshll.u32 %s813_s16, 2 }
   0xf   : > { %620 = vmatpush3.bf16.msra.mxu0 %v684_v5  ;;  %665 = vmatpush3.bf16.msra.mxu1 %v684_v5  ;;  %s766_s9 = scalar_lea.vmem %s808_s0, %s583_s29  ;;  %s175_s4 = scalar_lea.vmem %s811_s3, %s583_s29 }
  0x10   : > { %621 = vmatprep.subr.bf16.mxu0 %v685_v6  ;;  %658 = vmatprep.subr.bf16.mxu1 %v685_v6  ;;  %v178_v11 = vld [vmem:[%s766_s9] sm:$0xf]  ;;  %v179_v12 = vld [vmem:[%s766_s9 + $0x4] sm:$0xf]  ;;  %v182_v13 = vld [vmem:[%s766_s9 + $0x10] sm:$0xf] }
  0x11   : > { %v186_v14 = vunpack.c.l.u8.bf16 %v178_v11  ;;  %v187_v15 = vunpack.c.l.u8.bf16 %v179_v12  ;;  %v183_v16 = vld [vmem:[%s766_s9 + $0x14] sm:$0xf]  ;;  %v190_v17 = vunpack.c.l.u8.bf16 %v182_v13  ;;  %v180_v25 = vld [vmem:[%s766_s9 + $0x8] sm:$0xf]  ;;  %v181_v26 = vld [vmem:[%s766_s9 + $0xc] sm:$0xf] }
  0x12   : > { %v191_v18 = vunpack.c.l.u8.bf16 %v183_v16  ;;  %v184_v27 = vld [vmem:[%s766_s9 + $0x18] sm:$0xf]  ;;  %v185_v28 = vld [vmem:[%s766_s9 + $0x1c] sm:$0xf]  ;;  %v188_v30 = vunpack.c.l.u8.bf16 %v180_v25  ;;  %v189_v31 = vunpack.c.l.u8.bf16 %v181_v26 }
  0x13   : > { %622 = vmatpush3.bf16.msra.mxu0 %v686_v7  ;;  %666 = vmatpush3.bf16.msra.mxu1 %v686_v7  ;;  %v550_v20 = vcombine.high %v186_v14, %v187_v15  ;;  %v192_v32 = vunpack.c.l.u8.bf16 %v184_v27  ;;  %v193_v33 = vunpack.c.l.u8.bf16 %v185_v28  ;;  %v549_v34 = vcombine.low %v186_v14, %v187_v15 }
  0x14   : > { %623 = vmatprep.subr.bf16.mxu0 %v687_v8  ;;  %659 = vmatprep.subr.bf16.mxu1 %v687_v8  ;;  %v554_v22 = vcombine.high %v190_v17, %v191_v18  ;;  %v553_v35 = vcombine.low %v190_v17, %v191_v18  ;;  %v552_v36 = vcombine.high %v188_v30, %v189_v31 }
  0x15   : > { %401 = vmatprep.mubr.bf16.mxu0 %v550_v20  ;;  %v556_v37 = vcombine.high %v192_v32, %v193_v33  ;;  %v551_v38 = vcombine.low %v188_v30, %v189_v31  ;;  %v555_v39 = vcombine.low %v192_v32, %v193_v33 }
  0x16   : > { %417 = vmatprep.mubr.bf16.mxu1 %v554_v22 }
  0x17   : > { %624 = vmatpush3.bf16.msra.mxu0 %v688_v9  ;;  %667 = vmatpush3.bf16.msra.mxu1 %v688_v9 }
  0x18   : > { %625 = vmatprep.subr.bf16.mxu0 %v689_v10  ;;  %660 = vmatprep.subr.bf16.mxu1 %v689_v10 }
  0x1b   : > { %626 = vmatpush3.bf16.msra.mxu0 %v690_v19  ;;  %668 = vmatpush3.bf16.msra.mxu1 %v690_v19 }
  0x1c   : > { %627 = vmatprep.subr.bf16.mxu0 %v691_v21  ;;  %661 = vmatprep.subr.bf16.mxu1 %v691_v21 }
  0x1f   : > { %628 = vmatpush3.bf16.msra.mxu0 %v692_v23  ;;  %669 = vmatpush3.bf16.msra.mxu1 %v692_v23 }
  0x20   : > { %629 = vmatprep.subr.bf16.mxu0 %v693_v24  ;;  %662 = vmatprep.subr.bf16.mxu1 %v693_v24 }
  0x23   : > { %630 = vmatpush3.bf16.msra.mxu0 %v694_v29  ;;  %670 = vmatpush3.bf16.msra.mxu1 %v694_v29 }
  0x26   : > { %402 = vmatmul.mubr.bf16.vlgmr.msra.gmra.mrb[0].mxu0 %v549_v34  ;;  %418 = vmatmul.mubr.bf16.vlgmr.msra.gmra.mrb[0].mxu1 %v553_v35 }
  0x27   : > { %409 = vmatprep.mubr.bf16.mxu0 %v552_v36  ;;  %425 = vmatprep.mubr.bf16.mxu1 %v556_v37 }
  0x2e   : > { %410 = vmatmul.mubr.bf16.gmra.mrb[4].mxu0 %v551_v38  ;;  %426 = vmatmul.mubr.bf16.gmra.mrb[4].mxu1 %v555_v39 }
  0xf9   : > { %v631_v40 = vpop.f32.mrb[0].mxu0  ;;  %v643_v41 = vpop.f32.mrb[0].mxu1 }
  0xfa   : > { %v632_v43 = vpop.f32.mrb[1].mxu0  ;;  %v644_v44 = vpop.f32.mrb[1].mxu1 }
  0xfb   : > { %v633_v45 = vadd.f32 %v632_v43, %v631_v40  ;;  %v645_v46 = vadd.f32 %v644_v44, %v643_v41  ;;  %v634_v47 = vpop.f32.mrb[2].mxu0  ;;  %v646_v48 = vpop.f32.mrb[2].mxu1 }
  0xfc   : > { %v635_v49 = vpop.f32.mrb[3].mxu0  ;;  %v647_v50 = vpop.f32.mrb[3].mxu1 }
  0xfd   : > { %v404_v51 = vadd.f32 %v633_v45, %v548_v42  ;;  %v420_v52 = vadd.f32 %v645_v46, %v548_v42  ;;  %v636_v53 = vadd.f32 %v635_v49, %v634_v47  ;;  %v648_v54 = vadd.f32 %v647_v50, %v646_v48 }
  0xff   : > { %v407_v55 = vadd.f32 %v636_v53, %v548_v42  ;;  %v423_v56 = vadd.f32 %v648_v54, %v548_v42  ;;  %v434_v57 = vmax.f32 %v404_v51, 0.0  ;;  %v438_v58 = vmax.f32 %v420_v52, 0.0 }
 0x101   : > { %v435_v59 = vmax.f32 %v407_v55, 0.0  ;;  %v439_v60 = vmax.f32 %v423_v56, 0.0  ;;  %v637_v61 = vpop.f32.mrb[4].mxu0  ;;  %v649_v62 = vpop.f32.mrb[4].mxu1 }
 0x102   : > { %v638_v63 = vpop.f32.mrb[5].mxu0  ;;  %v650_v0 = vpop.f32.mrb[5].mxu1 }
 0x103   : > { %v595_v1 = vpack.c.bf16 %v435_v59, %v434_v57  ;;  %v605_v2 = vpack.c.bf16 %v439_v60, %v438_v58  ;;  %v639_v3 = vadd.f32 %v638_v63, %v637_v61  ;;  %v651_v4 = vadd.f32 %v650_v0, %v649_v62  ;;  %v640_v5 = vpop.f32.mrb[6].mxu0  ;;  %v652_v6 = vpop.f32.mrb[6].mxu1 }
 0x104   : > { %v641_v7 = vpop.f32.mrb[7].mxu0  ;;  %v653_v8 = vpop.f32.mrb[7].mxu1 }
 0x105   : > { %596 = vst [vmem:[%s175_s4] sm:$0xff] %v595_v1   ;;  %613 = vst [vmem:[%s175_s4 + $0x10] sm:$0xff] %v605_v2   ;;  %v412_v9 = vadd.f32 %v639_v3, %v548_v42  ;;  %v428_v10 = vadd.f32 %v651_v4, %v548_v42  ;;  %v642_v11 = vadd.f32 %v641_v7, %v640_v5 }
 0x106   : > { %v654_v12 = vadd.f32 %v653_v8, %v652_v6 }
 0x107   : > { %v415_v13 = vadd.f32 %v642_v11, %v548_v42  ;;  %v436_v15 = vmax.f32 %v412_v9, 0.0  ;;  %v440_v16 = vmax.f32 %v428_v10, 0.0 }
 0x108   : > { %v431_v14 = vadd.f32 %v654_v12, %v548_v42 }
 0x109   : > { %v437_v17 = vmax.f32 %v415_v13, 0.0 }
 0x10a   : > { %v441_v18 = vmax.f32 %v431_v14, 0.0 }
 0x10b   : > { %v600_v19 = vpack.c.bf16 %v437_v17, %v436_v15 }
 0x10c   : > { %v610_v20 = vpack.c.bf16 %v441_v18, %v440_v16 }
 0x10d   : > { %612 = vst [vmem:[%s175_s4 + $0x8] sm:$0xff] %v600_v19  }
 0x10e   : > { %614 = vst [vmem:[%s175_s4 + $0x18] sm:$0xff] %v610_v20  }
 0x10f PF: > { %s13_s12 = sadd.s32 1, %s701_s12  }
 0x110   : > { %p10_p4 = scmp.ge.s32.totalorder %s13_s12, 4  }
 0x112   :  { %12 = sbr.rel (!%p10_p4) target bundleno = 1 (0x1), region = 62 }

// kernel: iqn_forward.4
= control target key start
LH: loop header
LB: loop body
LE: loop exit
PB: predicated region body
PF: predicated region fallthrough
CT: control target
= control target key end

     0   :  { %s730_s1 = inlined_call_operand.vmem [shape: bf16[512,128], index: 1, kind: input, shape index: {}]   ;;  %s731_s0 = inlined_call_operand.vmem [shape: bf16[18,512], index: 0, kind: input, shape index: {}]   ;;  %s732_s2 = inlined_call_operand.vmem [shape: f32[1,128], index: 2, kind: input, shape index: {}]   ;;  %s733_s3 = inlined_call_operand.vmem [shape: bf16[18,128], index: 3, kind: output, shape index: {}]  }
   0x1   :  { %v545_v0 = vld [vmem:[%s730_s1 + $0x40] sm:$0xff]   ;;  %v549_v4 = vld [vmem:[%s730_s1 + $0x48] sm:$0xff]   ;;  %v553_v8 = vld [vmem:[%s730_s1 + $0x50] sm:$0xff]  }
   0x2   :  { %v546_v1 = vld [vmem:[%s730_s1 + $0xc0] sm:$0xff]   ;;  %489 = vmatprep.subr.bf16.mxu0 %v545_v0  ;;  %v550_v5 = vld [vmem:[%s730_s1 + $0xc8] sm:$0xff]   ;;  %v554_v9 = vld [vmem:[%s730_s1 + $0xd0] sm:$0xff]  }
   0x3   :  { %v547_v2 = vld [vmem:[%s730_s1] sm:$0xff]   ;;  %517 = vmatprep.subr.bf16.mxu1 %v546_v1  ;;  %v551_v6 = vld [vmem:[%s730_s1 + $0x8] sm:$0xff]   ;;  %v555_v10 = vld [vmem:[%s730_s1 + $0x10] sm:$0xff]  }
   0x4   :  { %v548_v3 = vld [vmem:[%s730_s1 + $0x80] sm:$0xff]   ;;  %490 = vmatpush3.bf16.msra.mxu0 %v547_v2  ;;  %v552_v7 = vld [vmem:[%s730_s1 + $0x88] sm:$0xff]   ;;  %v556_v11 = vld [vmem:[%s730_s1 + $0x90] sm:$0xff]  }
   0x5   :  { %518 = vmatpush3.bf16.msra.mxu1 %v548_v3  ;;  %491 = vmatprep.subr.bf16.mxu0 %v549_v4  ;;  %v557_v12 = vld [vmem:[%s730_s1 + $0x58] sm:$0xff]   ;;  %v561_v16 = vld [vmem:[%s730_s1 + $0x60] sm:$0xff]   ;;  %v565_v20 = vld [vmem:[%s730_s1 + $0x68] sm:$0xff]  }
   0x6   :  { %519 = vmatprep.subr.bf16.mxu1 %v550_v5  ;;  %v558_v13 = vld [vmem:[%s730_s1 + $0xd8] sm:$0xff]   ;;  %v562_v17 = vld [vmem:[%s730_s1 + $0xe0] sm:$0xff]   ;;  %v566_v21 = vld [vmem:[%s730_s1 + $0xe8] sm:$0xff]  }
   0x7   :  { %v559_v14 = vld [vmem:[%s730_s1 + $0x18] sm:$0xff]   ;;  %v563_v18 = vld [vmem:[%s730_s1 + $0x20] sm:$0xff]   ;;  %v567_v22 = vld [vmem:[%s730_s1 + $0x28] sm:$0xff]  }
   0x8   :  { %492 = vmatpush3.bf16.msra.mxu0 %v551_v6  ;;  %v560_v15 = vld [vmem:[%s730_s1 + $0x98] sm:$0xff]   ;;  %v564_v19 = vld [vmem:[%s730_s1 + $0xa0] sm:$0xff]   ;;  %v568_v23 = vld [vmem:[%s730_s1 + $0xa8] sm:$0xff]  }
   0x9   :  { %520 = vmatpush3.bf16.msra.mxu1 %v552_v7  ;;  %493 = vmatprep.subr.bf16.mxu0 %v553_v8  ;;  %v569_v24 = vld [vmem:[%s730_s1 + $0x70] sm:$0xff]   ;;  %v573_v28 = vld [vmem:[%s730_s1 + $0x78] sm:$0xff]   ;;  %v19_v36 = vld [vmem:[%s731_s0 + $0x20] sm:$0x11] }
   0xa   :  { %521 = vmatprep.subr.bf16.mxu1 %v554_v9  ;;  %v570_v25 = vld [vmem:[%s730_s1 + $0xf0] sm:$0xff]   ;;  %v574_v29 = vld [vmem:[%s730_s1 + $0xf8] sm:$0xff]   ;;  %v443_v37 = vcombine.high %v19_v36, %v19_v36  ;;  %v20_v38 = vld [vmem:[%s731_s0 + $0x28] sm:$0x11]  ;;  %v442_v40 = vcombine.low %v19_v36, %v19_v36 }
   0xb   :  { %v571_v26 = vld [vmem:[%s730_s1 + $0x30] sm:$0xff]   ;;  %v575_v30 = vld [vmem:[%s730_s1 + $0x38] sm:$0xff]   ;;  %v445_v39 = vcombine.high %v20_v38, %v20_v38  ;;  %v444_v41 = vcombine.low %v20_v38, %v20_v38  ;;  %v437_v44 = vld [vmem:[%s732_s2] ss:$0 sm:$0xff] }
   0xc   :  { %494 = vmatpush3.bf16.msra.mxu0 %v555_v10  ;;  %v572_v27 = vld [vmem:[%s730_s1 + $0xb0] sm:$0xff]   ;;  %v576_v31 = vld [vmem:[%s730_s1 + $0xb8] sm:$0xff]  }
   0xd   :  { %522 = vmatpush3.bf16.msra.mxu1 %v556_v11  ;;  %495 = vmatprep.subr.bf16.mxu0 %v557_v12  ;;  %v577_v32 = vld [vmem:[%s731_s0] ss:$16 sps:$4 sm:$0xff]   ;;  %v579_v33 = vld [vmem:[%s731_s0 + $0x4] ss:$16 sps:$4 sm:$0xff]   ;;  %v580_v34 = vld [vmem:[%s731_s0 + $0x8] ss:$16 sps:$4 sm:$0xff]  }
   0xe   :  { %523 = vmatprep.subr.bf16.mxu1 %v558_v13  ;;  %v582_v35 = vld [vmem:[%s731_s0 + $0xc] ss:$16 sps:$4 sm:$0xff]   ;;  %350 = vmatprep.mubr.bf16.mxu0 %v579_v33 }
   0xf   :  { %398 = vmatprep.mubr.bf16.mxu1 %v582_v35 }
  0x10   :  { %496 = vmatpush3.bf16.msra.mxu0 %v559_v14 }
  0x11   :  { %524 = vmatpush3.bf16.msra.mxu1 %v560_v15  ;;  %497 = vmatprep.subr.bf16.mxu0 %v561_v16 }
  0x12   :  { %525 = vmatprep.subr.bf16.mxu1 %v562_v17 }
  0x14   :  { %498 = vmatpush3.bf16.msra.mxu0 %v563_v18 }
  0x15   :  { %526 = vmatpush3.bf16.msra.mxu1 %v564_v19  ;;  %499 = vmatprep.subr.bf16.mxu0 %v565_v20 }
  0x16   :  { %527 = vmatprep.subr.bf16.mxu1 %v566_v21 }
  0x18   :  { %500 = vmatpush3.bf16.msra.mxu0 %v567_v22 }
  0x19   :  { %528 = vmatpush3.bf16.msra.mxu1 %v568_v23  ;;  %501 = vmatprep.subr.bf16.mxu0 %v569_v24 }
  0x1a   :  { %529 = vmatprep.subr.bf16.mxu1 %v570_v25 }
  0x1c   :  { %502 = vmatpush3.bf16.msra.mxu0 %v571_v26 }
  0x1d   :  { %530 = vmatpush3.bf16.msra.mxu1 %v572_v27  ;;  %503 = vmatprep.subr.bf16.mxu0 %v573_v28 }
  0x1e   :  { %531 = vmatprep.subr.bf16.mxu1 %v574_v29 }
  0x20   :  { %504 = vmatpush3.bf16.msra.mxu0 %v575_v30 }
  0x21   :  { %532 = vmatpush3.bf16.msra.mxu1 %v576_v31 }
  0x23   :  { %351 = vmatmul.mubr.bf16.vlgmr.msra.gmra.mrb[0].mxu0 %v577_v32 }
  0x24   :  { %399 = vmatmul.mubr.bf16.vlgmr.msra.gmra.mrb[0].mxu1 %v580_v34  ;;  %358 = vmatprep.mubr.bf16.mxu0 %v443_v37 }
  0x25   :  { %406 = vmatprep.mubr.bf16.mxu1 %v445_v39 }
  0x2b   :  { %359 = vmatmul.mubr.bf16.gmra.mrb[4].mxu0 %v442_v40 }
  0x2c   :  { %407 = vmatmul.mubr.bf16.gmra.mrb[4].mxu1 %v444_v41 }
  0xf6   :  { %v505_v42 = vpop.f32.mrb[0].mxu0 }
  0xf7   :  { %v533_v43 = vpop.f32.mrb[0].mxu1  ;;  %v506_v45 = vpop.f32.mrb[1].mxu0 }
  0xf8   :  { %v507_v46 = vadd.f32 %v506_v45, %v505_v42  ;;  %v534_v47 = vpop.f32.mrb[1].mxu1  ;;  %v508_v48 = vpop.f32.mrb[2].mxu0 }
  0xf9   :  { %v535_v49 = vadd.f32 %v534_v47, %v533_v43  ;;  %v536_v50 = vpop.f32.mrb[2].mxu1  ;;  %v509_v51 = vpop.f32.mrb[3].mxu0 }
  0xfa   :  { %v353_v52 = vadd.f32 %v507_v46, %v437_v44  ;;  %v510_v53 = vadd.f32 %v509_v51, %v508_v48  ;;  %v537_v54 = vpop.f32.mrb[3].mxu1 }
  0xfb   :  { %v538_v55 = vadd.f32 %v537_v54, %v536_v50 }
  0xfc   :  { %v401_v56 = vadd.f32 %v535_v49, %v353_v52  ;;  %v356_v57 = vadd.f32 %v510_v53, %v437_v44 }
  0xfe   :  { %v404_v58 = vadd.f32 %v538_v55, %v356_v57  ;;  %v511_v59 = vpop.f32.mrb[4].mxu0  ;;  %v414_v62 = vmax.f32 %v401_v56, 0.0 }
  0xff   :  { %v539_v60 = vpop.f32.mrb[4].mxu1  ;;  %v512_v61 = vpop.f32.mrb[5].mxu0 }
 0x100   :  { %v415_v63 = vmax.f32 %v404_v58, 0.0  ;;  %v513_v0 = vadd.f32 %v512_v61, %v511_v59  ;;  %v540_v1 = vpop.f32.mrb[5].mxu1  ;;  %v514_v2 = vpop.f32.mrb[6].mxu0 }
 0x101   :  { %v541_v3 = vadd.f32 %v540_v1, %v539_v60  ;;  %v542_v4 = vpop.f32.mrb[6].mxu1  ;;  %v515_v5 = vpop.f32.mrb[7].mxu0 }
 0x102   :  { %v487_v6 = vpack.c.bf16 %v415_v63, %v414_v62  ;;  %v361_v7 = vadd.f32 %v513_v0, %v437_v44  ;;  %v543_v8 = vpop.f32.mrb[7].mxu1 }
 0x104   :  { %v409_v9 = vadd.f32 %v541_v3, %v361_v7  ;;  %488 = vst [vmem:[%s733_s3] sm:$0xff] %v487_v6  }
 0x106   :  { %v416_v10 = vmax.f32 %v409_v9, 0.0 }
 0x108   :  { %v483_v11 = vpack.c.bf16 %v416_v10, %v416_v10 }
 0x10a   :  { %432 = vst [vmem:[%s733_s3 + $0x8] sm:$0x1] %v483_v11 }

// kernel: iqn_forward.5
= control target key start
LH: loop header
LB: loop body
LE: loop exit
PB: predicated region body
PF: predicated region fallthrough
CT: control target
= control target key end

     0   :  { %v127_v29 = vlaneseq  ;;  %v2333_v32 = vmov 1966171168   ;;  %v2334_v36 = vmov 0.0   ;;  %vm2335_vm0 = vmmov 0   ;;  %s3059_s0 = inlined_call_operand.vmem [shape: bf16[2,576], index: 0, kind: input, shape index: {}]   ;;  %s3060_s1 = inlined_call_operand.vmem [shape: f32[16,128], index: 1, kind: input, shape index: {}]   ;;  %s3061_s2 = inlined_call_operand.vmem [shape: f32[2,16], index: 2, kind: input, shape index: {}]   ;;  %s3062_s3 = inlined_call_operand.vmem [shape: bf16[576,128], index: 3, kind: input, shape index: {}]   ;;  %s3063_s4 = inlined_call_operand.vmem [shape: f32[1,128], index: 4, kind: input, shape index: {}]   ;;  %s3064_s5 = inlined_call_operand.vmem [shape: bf16[128,512], index: 5, kind: input, shape index: {}]   ;;  %s3065_s6 = inlined_call_operand.vmem [shape: f32[1,512], index: 6, kind: input, shape index: {}]   ;;  %s3066_s7 = inlined_call_operand.vmem [shape: bf16[128,512], index: 7, kind: input, shape index: {}]   ;;  %s3067_s8 = inlined_call_operand.vmem [shape: f32[1,512], index: 8, kind: input, shape index: {}]   ;;  %s3068_s9 = inlined_call_operand.vmem [shape: bf16[512,128], index: 9, kind: input, shape index: {}]   ;;  %s3069_s10 = inlined_call_operand.vmem [shape: f32[1,128], index: 10, kind: input, shape index: {}]   ;;  %s3070_s11 = inlined_call_operand.vmem [shape: f32[16,128], index: 11, kind: output, shape index: {0}]   ;;  %s3071_s12 = inlined_call_operand.hbm [shape: f32[2,128], index: 12, kind: output, shape index: {1}]  }
   0x1   :  { %v2136_v0 = vld [vmem:[%s3062_s3 + $0x40] sm:$0xff]   ;;  %v2140_v4 = vld [vmem:[%s3062_s3 + $0x48] sm:$0xff]   ;;  %v2144_v8 = vld [vmem:[%s3062_s3 + $0x50] sm:$0xff]   ;;  %v125_v33 = vunpack.c.l.s4 %v2333_v32  ;;  %vm382_vm1 = vcmask 523264  }
   0x2   :  { %v2137_v1 = vld [vmem:[%s3062_s3] sm:$0xff]   ;;  %1998 = vmatprep.subr.bf16.mxu0 %v2136_v0  ;;  %v2141_v5 = vld [vmem:[%s3062_s3 + $0x8] sm:$0xff]   ;;  %v2145_v9 = vld [vmem:[%s3062_s3 + $0x10] sm:$0xff]   ;;  %v2503_v34 = vshrl.u32 %v127_v29, 7 }
   0x3   :  { %v2138_v2 = vld [vmem:[%s3062_s3 + $0xc0] sm:$0xff]   ;;  %1999 = vmatpush3.bf16.msra.mxu0 %v2137_v1  ;;  %v2142_v6 = vld [vmem:[%s3062_s3 + $0xc8] sm:$0xff]   ;;  %v2146_v10 = vld [vmem:[%s3062_s3 + $0xd0] sm:$0xff]   ;;  %v126_v37 = vunpack.c.0.s8 %v125_v33 }
   0x4   :  { %v2139_v3 = vld [vmem:[%s3062_s3 + $0x80] sm:$0xff]   ;;  %2020 = vmatprep.subr.bf16.mxu1 %v2138_v2  ;;  %2000 = vmatprep.subr.bf16.mxu0 %v2140_v4  ;;  %v2143_v7 = vld [vmem:[%s3062_s3 + $0x88] sm:$0xff]   ;;  %v2147_v11 = vld [vmem:[%s3062_s3 + $0x90] sm:$0xff]  }
   0x5   :  { %2021 = vmatpush3.bf16.msra.mxu1 %v2139_v3  ;;  %v2148_v12 = vld [vmem:[%s3062_s3 + $0x58] sm:$0xff]   ;;  %v2152_v16 = vld [vmem:[%s3062_s3 + $0x60] sm:$0xff]   ;;  %v2156_v20 = vld [vmem:[%s3062_s3 + $0x68] sm:$0xff]   ;;  %v2513_v39 = vsub.s32 %v126_v37, %v2503_v34 }
   0x6   :  { %2022 = vmatprep.subr.bf16.mxu1 %v2142_v6  ;;  %v2149_v13 = vld [vmem:[%s3062_s3 + $0x18] sm:$0xff]   ;;  %v2153_v17 = vld [vmem:[%s3062_s3 + $0x20] sm:$0xff]   ;;  %v2157_v21 = vld [vmem:[%s3062_s3 + $0x28] sm:$0xff]  }
   0x7   :  { %2001 = vmatpush3.bf16.msra.mxu0 %v2141_v5  ;;  %v2150_v14 = vld [vmem:[%s3062_s3 + $0xd8] sm:$0xff]   ;;  %v2154_v18 = vld [vmem:[%s3062_s3 + $0xe0] sm:$0xff]   ;;  %v2158_v22 = vld [vmem:[%s3062_s3 + $0xe8] sm:$0xff]  }
   0x8   :  { %2002 = vmatprep.subr.bf16.mxu0 %v2144_v8  ;;  %v2151_v15 = vld [vmem:[%s3062_s3 + $0x98] sm:$0xff]   ;;  %v2155_v19 = vld [vmem:[%s3062_s3 + $0xa0] sm:$0xff]   ;;  %v2159_v23 = vld [vmem:[%s3062_s3 + $0xa8] sm:$0xff]  }
   0x9   :  { %2023 = vmatpush3.bf16.msra.mxu1 %v2143_v7  ;;  %v2160_v24 = vld [vmem:[%s3062_s3 + $0x70] sm:$0xff]   ;;  %v2164_v28 = vld [vmem:[%s3062_s3 + $0x78] sm:$0xff]   ;;  %v42_v38 = vld [vmem:[%s3059_s0] sm:$0x1f] }
   0xa   :  { %2024 = vmatprep.subr.bf16.mxu1 %v2146_v10  ;;  %v2161_v25 = vld [vmem:[%s3062_s3 + $0x30] sm:$0xff]   ;;  %v2165_v30 = vld [vmem:[%s3062_s3 + $0x38] sm:$0xff]   ;;  %v130_v41 = vrot.slane %v42_v38, %v2513_v39  ;;  %v2169_v45 = vld [vmem:[%s3062_s3 + $0x100] sm:$0xff]   ;;  %v123_v54 = vcombine.high %v42_v38, %v42_v38 }
   0xb   :  { %2003 = vmatpush3.bf16.msra.mxu0 %v2145_v9  ;;  %v2162_v26 = vld [vmem:[%s3062_s3 + $0xf0] sm:$0xff]   ;;  %v2166_v31 = vld [vmem:[%s3062_s3 + $0xf8] sm:$0xff]   ;;  %v2170_v48 = vld [vmem:[%s3062_s3 + $0x108] sm:$0xff]  }
   0xc   :  { %2004 = vmatprep.subr.bf16.mxu0 %v2148_v12  ;;  %v2163_v27 = vld [vmem:[%s3062_s3 + $0xb0] sm:$0xff]   ;;  %v2168_v35 = vld [vmem:[%s3062_s3 + $0xb8] sm:$0xff]   ;;  %v138_v42 = vcombine.high %v130_v41, %v130_v41  ;;  %v145_v43 = vrot.slane %v130_v41, %v2513_v39  ;;  %v137_v57 = vrot.slane %v123_v54, %v2513_v39 }
   0xd   :  { %2025 = vmatpush3.bf16.msra.mxu1 %v2147_v11  ;;  %v2175_v40 = vld [vmem:[%s3064_s5 + $0x4] ss:$16 sps:$4 sm:$0xff]   ;;  %v2173_v49 = vld [vmem:[%s3064_s5] ss:$16 sps:$4 sm:$0xff]   ;;  %v2172_v56 = vld [vmem:[%s3062_s3 + $0x118] sm:$0xff]  }
   0xe   :  { %2026 = vmatprep.subr.bf16.mxu1 %v2150_v14  ;;  %v159_v44 = vrot.slane %v138_v42, %v2513_v39  ;;  %v160_v46 = vcombine.high %v145_v43, %v145_v43  ;;  %v2181_v50 = vld [vmem:[%s3064_s5 + $0x24] ss:$16 sps:$4 sm:$0xff]   ;;  %v2179_v51 = vld [vmem:[%s3064_s5 + $0x20] ss:$16 sps:$4 sm:$0xff]   ;;  %v2178_v58 = vld [vmem:[%s3064_s5 + $0xc] ss:$16 sps:$4 sm:$0xff]   ;;  %v152_v60 = vrot.slane %v137_v57, %v2513_v39 }
   0xf   :  { %2005 = vmatpush3.bf16.msra.mxu0 %v2149_v13  ;;  %v2187_v52 = vld [vmem:[%s3064_s5 + $0x44] ss:$16 sps:$4 sm:$0xff]   ;;  %v2185_v55 = vld [vmem:[%s3064_s5 + $0x40] ss:$16 sps:$4 sm:$0xff]   ;;  %v2176_v59 = vld [vmem:[%s3064_s5 + $0x8] ss:$16 sps:$4 sm:$0xff]  }
  0x10   :  { %2006 = vmatprep.subr.bf16.mxu0 %v2152_v16  ;;  %418 = vmatprep.mubr.bf16.mxu0 %v159_v44  ;;  %v161_v47 = vcombine.high %v159_v44, %v159_v44  ;;  %v2171_v53 = vld [vmem:[%s3062_s3 + $0x110] sm:$0xff]   ;;  %v2184_v61 = vld [vmem:[%s3064_s5 + $0x2c] ss:$16 sps:$4 sm:$0xff]   ;;  %v2182_v62 = vld [vmem:[%s3064_s5 + $0x28] ss:$16 sps:$4 sm:$0xff]  }
  0x11   :  { %2027 = vmatpush3.bf16.msra.mxu1 %v2151_v15  ;;  %v2190_v63 = vld [vmem:[%s3064_s5 + $0x4c] ss:$16 sps:$4 sm:$0xff]   ;;  %v2188_v0 = vld [vmem:[%s3064_s5 + $0x48] ss:$16 sps:$4 sm:$0xff]  }
  0x12   :  { %2028 = vmatprep.subr.bf16.mxu1 %v2154_v18  ;;  %458 = vmatprep.mubr.bf16.mxu1 %v161_v47 }
  0x13   :  { %2007 = vmatpush3.bf16.msra.mxu0 %v2153_v17 }
  0x14   :  { %2008 = vmatprep.subr.bf16.mxu0 %v2156_v20 }
  0x15   :  { %2029 = vmatpush3.bf16.msra.mxu1 %v2155_v19 }
  0x16   :  { %2030 = vmatprep.subr.bf16.mxu1 %v2158_v22 }
  0x17   :  { %2009 = vmatpush3.bf16.msra.mxu0 %v2157_v21 }
  0x18   :  { %2010 = vmatprep.subr.bf16.mxu0 %v2160_v24 }
  0x19   :  { %2031 = vmatpush3.bf16.msra.mxu1 %v2159_v23 }
  0x1a   :  { %2032 = vmatprep.subr.bf16.mxu1 %v2162_v26 }
  0x1b   :  { %2011 = vmatpush3.bf16.msra.mxu0 %v2161_v25 }
  0x1c   :  { %2012 = vmatprep.subr.bf16.mxu0 %v2164_v28 }
  0x1d   :  { %2033 = vmatpush3.bf16.msra.mxu1 %v2163_v27 }
  0x1e   :  { %2034 = vmatprep.subr.bf16.mxu1 %v2166_v31 }
  0x1f   :  { %2013 = vmatpush3.bf16.msra.mxu0 %v2165_v30 }
  0x20   :  { %2094 = vmatprep.subr.bf16.mxu0 %v2334_v36 }
  0x21   :  { %2035 = vmatpush3.bf16.msra.mxu1 %v2168_v35 }
  0x22   :  { %722 = vmatprep.subr.bf16.mxu1 %v2175_v40  ;;  %419 = vmatmul.mubr.bf16.vlgmr.msra.gmra.mrb[0].mxu0 %v145_v43 }
  0x23   :  { %2095 = vmatpush3.bf16.msra.mxu0 %v2169_v45  ;;  %2102 = vmatprep.mubr.msk.bf16.mxu0 %vm2335_vm0, %v2334_v36 }
  0x24   :  { %459 = vmatmul.mubr.bf16.vlgmr.msra.gmra.mrb[0].mxu1 %v160_v46  ;;  %2096 = vmatprep.subr.bf16.mxu0 %v2334_v36 }
  0x25   :  { %723 = vmatpush1.bf16.msra.mxu1 %v2173_v49 }
  0x26   :  { %724 = vmatprep.subr.bf16.mxu1 %v2181_v50 }
  0x27   :  { %2097 = vmatpush3.bf16.msra.mxu0 %v2170_v48 }
  0x28   :  { %2098 = vmatprep.subr.bf16.mxu0 %v2334_v36 }
  0x29   :  { %725 = vmatpush1.bf16.msra.mxu1 %v2179_v51 }
  0x2a   :  { %726 = vmatprep.subr.bf16.mxu1 %v2187_v52 }
  0x2b   :  { %2099 = vmatpush3.bf16.msra.mxu0 %v2171_v53 }
  0x2c   :  { %2100 = vmatprep.subr.bf16.mxu0 %v2334_v36 }
  0x2d   :  { %727 = vmatpush1.bf16.msra.mxu1 %v2185_v55 }
  0x2f   :  { %2101 = vmatpush3.bf16.msra.mxu0 %v2172_v56 }
  0x30   :  { %763 = vmatprep.subr.bf16.mxu0 %v2178_v58 }
  0x32   :  { %2103 = vmatmul.mubr.msk.bf16.vlgmr.msra.gmra.mrb[4].mxu0 %vm382_vm1, %v152_v60 }
  0x33   :  { %764 = vmatpush1.bf16.msra.mxu0 %v2176_v59 }
  0x34   :  { %765 = vmatprep.subr.bf16.mxu0 %v2184_v61 }
  0x37   :  { %766 = vmatpush1.bf16.msra.mxu0 %v2182_v62 }
  0x38   :  { %767 = vmatprep.subr.bf16.mxu0 %v2190_v63 }
  0x3b   :  { %768 = vmatpush1.bf16.msra.mxu0 %v2188_v0 }
  0x3c   :  { %18 = vsyncpa [#allocation3], 0  ;;  %v2193_v1 = vld [vmem:[%s3064_s5 + $0x64] ss:$16 sps:$4 sm:$0xff]   ;;  %v2196_v2 = vld [vmem:[%s3064_s5 + $0x6c] ss:$16 sps:$4 sm:$0xff]  }
  0x3d   :  { %v2191_v3 = vld [vmem:[%s3064_s5 + $0x60] ss:$16 sps:$4 sm:$0xff]   ;;  %v2194_v4 = vld [vmem:[%s3064_s5 + $0x68] ss:$16 sps:$4 sm:$0xff]   ;;  %728 = vmatprep.subr.bf16.mxu1 %v2193_v1  ;;  %769 = vmatprep.subr.bf16.mxu0 %v2196_v2  ;;  %v2199_v6 = vld [vmem:[%s3064_s5 + $0x84] ss:$16 sps:$4 sm:$0xff]  }
  0x3e   :  { %729 = vmatpush1.bf16.msra.mxu1 %v2191_v3  ;;  %v2197_v5 = vld [vmem:[%s3064_s5 + $0x80] ss:$16 sps:$4 sm:$0xff]   ;;  %v2200_v7 = vld [vmem:[%s3064_s5 + $0x88] ss:$16 sps:$4 sm:$0xff]   ;;  %v2202_v8 = vld [vmem:[%s3064_s5 + $0x8c] ss:$16 sps:$4 sm:$0xff]  }
  0x3f   :  { %770 = vmatpush1.bf16.msra.mxu0 %v2194_v4  ;;  %v2205_v9 = vld [vmem:[%s3064_s5 + $0xa4] ss:$16 sps:$4 sm:$0xff]   ;;  %730 = vmatprep.subr.bf16.mxu1 %v2199_v6  ;;  %v2208_v10 = vld [vmem:[%s3064_s5 + $0xac] ss:$16 sps:$4 sm:$0xff]   ;;  %v2203_v11 = vld [vmem:[%s3064_s5 + $0xa0] ss:$16 sps:$4 sm:$0xff]  }
  0x40   :  { %771 = vmatprep.subr.bf16.mxu0 %v2202_v8  ;;  %v2609_v12 = vld [vmem:[%s3060_s1] sm:$0xff]  ;;  %v2206_v13 = vld [vmem:[%s3064_s5 + $0xa8] ss:$16 sps:$4 sm:$0xff]   ;;  %v2214_v15 = vld [vmem:[%s3064_s5 + $0xcc] ss:$16 sps:$4 sm:$0xff]   ;;  %v2336_v31 = vmov 0  }
  0x41   :  { %v2211_v14 = vld [vmem:[%s3064_s5 + $0xc4] ss:$16 sps:$4 sm:$0xff]   ;;  %v2623_v16 = vld [vmem:[%s3060_s1 + $0x8] sm:$0xff]  ;;  %v813_v17 = vand.u32 2139095040, %v2609_v12  ;;  %v2209_v18 = vld [vmem:[%s3064_s5 + $0xc0] ss:$16 sps:$4 sm:$0xff]   ;;  %754 = vmatprep.mubr.bf16.mxu1 %v2336_v31  ;;  %795 = vmatprep.mubr.bf16.mxu0 %v2336_v31 }
  0x42   :  { %731 = vmatpush1.bf16.msra.mxu1 %v2197_v5  ;;  %v2212_v19 = vld [vmem:[%s3064_s5 + $0xc8] ss:$16 sps:$4 sm:$0xff]   ;;  %v916_v20 = vand.u32 2139095040, %v2623_v16  ;;  %v2217_v22 = vld [vmem:[%s3064_s5 + $0xe4] ss:$16 sps:$4 sm:$0xff]   ;;  %vm812_vm1 = vcmp.lt.s32.totalorder %v2609_v12, 0 }
  0x43   :  { %772 = vmatpush1.bf16.msra.mxu0 %v2200_v7  ;;  %732 = vmatprep.subr.bf16.mxu1 %v2205_v9  ;;  %v814_v21 = vshrl.u32 %v813_v17, 23  ;;  %v2220_v23 = vld [vmem:[%s3064_s5 + $0xec] ss:$16 sps:$4 sm:$0xff]   ;;  %v2215_v24 = vld [vmem:[%s3064_s5 + $0xe0] ss:$16 sps:$4 sm:$0xff]   ;;  %s2344_s26 = smov [#allocation2]  }
  0x44   :  { %773 = vmatprep.subr.bf16.mxu0 %v2208_v10  ;;  %v2218_v25 = vld [vmem:[%s3064_s5 + $0xe8] ss:$16 sps:$4 sm:$0xff]   ;;  %v917_v26 = vshrl.u32 %v916_v20, 23  ;;  %v2223_v28 = vld [vmem:[%s3066_s7 + $0x4] ss:$16 sps:$4 sm:$0xff]   ;;  %s1844_s27 = sshll.u32 %s2344_s26, 4  ;;  %s1845_s27 = int_to_ptr.vmem [resolvable:$true] %s1844_s27 }
  0x45   :  { %v1924_v27 = vadd.s32 4294967169, %v814_v21  ;;  %v2226_v29 = vld [vmem:[%s3066_s7 + $0xc] ss:$16 sps:$4 sm:$0xff]   ;;  %v810_v42 = vand.u32 2147483647, %v2609_v12  ;;  %s2309_s28 = scalar_lea.vmem %s1845_s27, 32  ;;  %p2314_p1 = scmp.lt.s32.totalorder %s1845_s27, %s1845_s27 }
  0x46   :  { %733 = vmatpush1.bf16.msra.mxu1 %v2203_v11  ;;  %v1928_v30 = vadd.s32 4294967169, %v917_v26  ;;  %v2337_v44 = vmov 2102212464   ;;  %v2338_v46 = vmov 920167782   ;;  %p2310_p0 = scmp.ne.s32.totalorder %s1845_s27, %s2309_s28  ;;  %p2315_p2 = scmp.lt.s32.totalorder %s2309_s28, %s2309_s28 }
  0x47   :  { %774 = vmatpush1.bf16.msra.mxu0 %v2206_v13  ;;  %734 = vmatprep.subr.bf16.mxu1 %v2211_v14  ;;  %v820_v32 = vadd.s32 1, %v1924_v27  ;;  %v817_v48 = vand.u32 8388607, %v810_v42  ;;  %v2339_v50 = vmov 683565275  }
  0x48   :  { %775 = vmatprep.subr.bf16.mxu0 %v2214_v15  ;;  %v923_v33 = vadd.s32 1, %v1928_v30  ;;  %v2340_v53 = vmov 1326507024   ;;  %v2341_v55 = vmov 2475754826   ;;  %p2316_p3 = por %p2315_p2, %p2314_p1 }
  0x49   :  { %vm821_vm2 = vcmp.gt.s32.totalorder %v820_v32, 0  ;;  %v2342_v58 = vmov 2131351028   ;;  %v913_v1 = vand.u32 2147483647, %v2623_v16  ;;  %v818_v20 = vor.u32 8388608, %v817_v48 }
  0x4a   :  { %735 = vmatpush1.bf16.msra.mxu1 %v2209_v18  ;;  %v822_v35 = vsel %vm821_vm2, %v820_v32, 0  ;;  %vm924_vm3 = vcmp.gt.s32.totalorder %v923_v33, 0  ;;  %vm915_vm2 = vcmp.lt.s32.totalorder %v2623_v16, 0  ;;  %p2317_p4 = pnand %p2316_p3, %p2310_p0 }
  0x4b   :  { %776 = vmatpush1.bf16.msra.mxu0 %v2212_v19  ;;  %736 = vmatprep.subr.bf16.mxu1 %v2217_v22  ;;  %v824_v37 = vand.u32 31, %v822_v35  ;;  %v925_v38 = vsel %vm924_vm3, %v923_v33, 0  ;;  %v2661_v49 = vshrl.u32 %v822_v35, 5  ;;  %v920_v18 = vand.u32 8388607, %v913_v1 }
  0x4c   :  { %777 = vmatprep.subr.bf16.mxu0 %v2220_v23  ;;  %v927_v40 = vand.u32 31, %v925_v38  ;;  %v2670_v2 = vshrl.u32 %v925_v38, 5  ;;  %v858_v35 = vshll.u32 %v818_v20, 8  ;;  %vm2772_vm3 = vcmp.le.f32.partialorder %v810_v42, 0.7853982 }
  0x4d   :  { %v2653_v41 = vsub.s32 32, %v824_v37  ;;  %v836_v45 = vshll.u32 %v2337_v44, %v824_v37  ;;  %v827_v51 = vshll.u32 %v2339_v50, %v824_v37  ;;  %v839_v52 = vshll.u32 %v2338_v46, %v824_v37 }
  0x4e   :  { %737 = vmatpush1.bf16.msra.mxu1 %v2215_v24  ;;  %v2656_v43 = vsub.s32 32, %v927_v40  ;;  %v830_v57 = vshll.u32 %v2341_v55, %v824_v37  ;;  %v833_v60 = vshll.u32 %v2342_v58, %v824_v37  ;;  %v939_v63 = vshll.u32 %v2337_v44, %v927_v40 }
  0x4f   :  { %778 = vmatpush1.bf16.msra.mxu0 %v2218_v25  ;;  %1231 = vmatprep.subr.bf16.mxu1 %v2223_v28  ;;  %v837_v47 = vshrl.u32 %v2338_v46, %v2653_v41  ;;  %v840_v54 = vshrl.u32 %v2340_v53, %v2653_v41  ;;  %v828_v56 = vshrl.u32 %v2341_v55, %v2653_v41  ;;  %vm845_vm4 = vcmp.lt.s32.totalorder %v2661_v49, 4 }
  0x50   :  { %1274 = vmatprep.subr.bf16.mxu0 %v2226_v29  ;;  %v831_v59 = vshrl.u32 %v2342_v58, %v2653_v41  ;;  %v834_v61 = vshrl.u32 %v2337_v44, %v2653_v41  ;;  %v940_v0 = vshrl.u32 %v2338_v46, %v2656_v43  ;;  %v942_v3 = vshll.u32 %v2338_v46, %v927_v40 }
  0x51   :  { %v838_v62 = vor.u32 %v837_v47, %v836_v45  ;;  %v943_v4 = vshrl.u32 %v2340_v53, %v2656_v43  ;;  %v841_v5 = vor.u32 %v840_v54, %v839_v52  ;;  %v930_v6 = vshll.u32 %v2339_v50, %v927_v40 }
  0x52   :  { %v931_v7 = vshrl.u32 %v2341_v55, %v2656_v43  ;;  %v933_v8 = vshll.u32 %v2341_v55, %v927_v40  ;;  %v934_v9 = vshrl.u32 %v2342_v58, %v2656_v43  ;;  %v936_v10 = vshll.u32 %v2342_v58, %v927_v40 }
  0x53   :  { %v937_v11 = vshrl.u32 %v2337_v44, %v2656_v43  ;;  %v829_v13 = vor.u32 %v828_v56, %v827_v51  ;;  %v832_v14 = vor.u32 %v831_v59, %v830_v57  ;;  %v941_v15 = vor.u32 %v940_v0, %v939_v63 }
  0x54   :  { %v835_v17 = vor.u32 %v834_v61, %v833_v60  ;;  %v944_v19 = vor.u32 %v943_v4, %v942_v3  ;;  %vm948_vm5 = vcmp.lt.s32.totalorder %v2670_v2, 4  ;;  %vm842_vm6 = vcmp.lt.s32.totalorder %v2661_v49, 1 }
  0x55   :  { %vm844_vm7 = vcmp.lt.s32.totalorder %v2661_v49, 3  ;;  %v851_v21 = vsel %vm845_vm4, %v838_v62, 920167782  ;;  %v855_v22 = vsel %vm845_vm4, %v841_v5, 1326507024  ;;  %v932_v23 = vor.u32 %v931_v7, %v930_v6 }
  0x56   :  { %v935_v24 = vor.u32 %v934_v9, %v933_v8  ;;  %v938_v25 = vor.u32 %v937_v11, %v936_v10  ;;  %vm843_vm8 = vcmp.lt.s32.totalorder %v2661_v49, 2  ;;  %vm945_vm9 = vcmp.lt.s32.totalorder %v2670_v2, 1 }
  0x57   :  { %vm947_vm10 = vcmp.lt.s32.totalorder %v2670_v2, 3  ;;  %v954_v26 = vsel %vm948_vm5, %v941_v15, 920167782  ;;  %v850_v27 = vsel %vm842_vm6, %v829_v13, %v832_v14  ;;  %v852_v28 = vsel %vm844_vm7, %v835_v17, %v851_v21 }
  0x58   :  { %v921_v29 = vor.u32 8388608, %v920_v18  ;;  %v958_v30 = vsel %vm948_vm5, %v944_v19, 1326507024  ;;  %v854_v32 = vsel %vm842_vm6, %v832_v14, %v835_v17  ;;  %v856_v33 = vsel %vm844_vm7, %v838_v62, %v855_v22 }
  0x59   :  { %vm946_vm11 = vcmp.lt.s32.totalorder %v2670_v2, 2  ;;  %v953_v37 = vsel %vm945_vm9, %v932_v23, %v935_v24  ;;  %v955_v38 = vsel %vm947_vm10, %v938_v25, %v954_v26  ;;  %v853_v40 = vsel %vm843_vm8, %v850_v27, %v852_v28 }
  0x5a   :  { %v957_v44 = vsel %vm945_vm9, %v935_v24, %v938_v25  ;;  %v959_v45 = vsel %vm947_vm10, %v941_v15, %v958_v30  ;;  %v857_v46 = vsel %vm843_vm8, %v854_v32, %v856_v33  ;;  %v961_v47 = vshll.u32 %v921_v29, 8 }
  0x5b   :  { %v956_v48 = vsel %vm946_vm11, %v953_v37, %v955_v38  ;;  %v2717_v51 = vmul.u32.u64.low %v858_v35, %v853_v40  ;;  %v2718_v52 = vmul.u32.u64.high %v858_v35, %v853_v40, %v2717_v51  ;;  %v960_v53 = vsel %vm946_vm11, %v957_v44, %v959_v45 }
  0x5c   :  { %v826_v54 = vshrl.u32 %v2339_v50, %v2653_v41  ;;  %v2724_v55 = vmul.u32.u64.low %v858_v35, %v857_v46  ;;  %v2725_v56 = vmul.u32.u64.high %v858_v35, %v857_v46, %v2724_v55  ;;  %v847_v57 = vsel %vm845_vm4, %v835_v17, 2102212464 }
  0x5d   :  { %v2729_v58 = vmul.u32.u64.low %v961_v47, %v956_v48  ;;  %v2730_v59 = vmul.u32.u64.high %v961_v47, %v956_v48, %v2729_v58  ;;  %v929_v60 = vshrl.u32 %v2339_v50, %v2656_v43  ;;  %v950_v63 = vsel %vm948_vm5, %v938_v25, 2102212464 }
  0x5e   :  { %v2734_v61 = vmul.u32.u64.low %v961_v47, %v960_v53  ;;  %v2735_v62 = vmul.u32.u64.high %v961_v47, %v960_v53, %v2734_v61  ;;  %v846_v41 = vsel %vm842_vm6, %v826_v54, %v829_v13  ;;  %v848_v0 = vsel %vm844_vm7, %v832_v14, %v847_v57 }
  0x5f   :  { %v949_v3 = vsel %vm945_vm9, %v929_v60, %v932_v23  ;;  %v951_v4 = vsel %vm947_vm10, %v935_v24, %v950_v63  ;;  %v849_v43 = vsel %vm843_vm8, %v846_v41, %v848_v0  ;;  %v868_v50 = vadd.s32 1, %v2718_v52  ;;  %v1854_v60 = vld [vmem:[%s3063_s4] ss:$0 sm:$0xff] }
  0x60   :  { %vm867_vm12 = vc.u32 %v2725_v56, %v2717_v51  ;;  %v952_v5 = vsel %vm946_vm11, %v949_v3, %v951_v4  ;;  %v971_v6 = vadd.s32 1, %v2730_v59  ;;  %v865_v7 = vmul.u32 %v858_v35, %v849_v43 }
  0x61   :  { %vm970_vm13 = vc.u32 %v2735_v62, %v2729_v58  ;;  %v869_v8 = vsel %vm867_vm12, %v868_v50, %v2718_v52  ;;  %v968_v9 = vmul.u32 %v961_v47, %v952_v5  ;;  %v866_v35 = vadd.s32 %v2717_v51, %v2725_v56 }
  0x62   :  { %v972_v10 = vsel %vm970_vm13, %v971_v6, %v2730_v59  ;;  %v870_v11 = vadd.s32 %v869_v8, %v865_v7  ;;  %v969_v40 = vadd.s32 %v2729_v58, %v2735_v62  ;;  %vm2780_vm4 = vcmp.le.f32.partialorder %v913_v1, 0.7853982  ;;  %v2224_v1 = vld [vmem:[%s3066_s7 + $0x8] ss:$16 sps:$4 sm:$0xff]  }
  0x63   :  { %v973_v49 = vadd.s32 %v972_v10, %v968_v9  ;;  %vm902_vm11 = vweird.f32 %v2609_v12  ;;  %vm1005_vm12 = vweird.f32 %v2623_v16 }
  0x64   :  { %v871_v13 = vadd.s32 536870912, %v870_v11 }
  0x65   :  { %v974_v14 = vadd.s32 536870912, %v973_v49 }
  0x66   :  { %v2757_v15 = vshrl.u32 %v871_v13, 30 }
  0x67   :  { %v2759_v17 = vshrl.u32 %v974_v14, 30 }
  0x68   :  { %v873_v2 = vshll.u32 %v2757_v15, 30 }
  0x69   :  { %v976_v18 = vshll.u32 %v2759_v17, 30 }
  0x6a   :  { %v874_v19 = vsub.s32 %v870_v11, %v873_v2  ;;  %v2268_v2 = vld [vmem:[%s3066_s7 + $0xec] ss:$16 sps:$4 sm:$0xff]  }
  0x6b   :  { %v977_v20 = vsub.s32 %v973_v49, %v976_v18 }
  0x6c   :  { %v876_v21 = vsub.s32 0, %v874_v19 }
  0x6d   :  { %v979_v22 = vsub.s32 0, %v977_v20 }
  0x6e   :  { %v1925_v23 = vmin.u32 %v876_v21, %v874_v19 }
  0x6f   :  { %v1929_v24 = vmin.u32 %v979_v22, %v977_v20 }
  0x70   :  { %v878_v25 = vclz %v1925_v23 }
  0x71   :  { %v981_v26 = vclz %v1929_v24 }
  0x72   :  { %v1926_v27 = vadd.s32 4294967294, %v878_v25 }
  0x73   :  { %v1930_v28 = vadd.s32 4294967294, %v981_v26  ;;  %v2221_v26 = vld [vmem:[%s3066_s7] ss:$16 sps:$4 sm:$0xff]  }
  0x74   :  { %vm1927_vm14 = vcmp.lt.s32.totalorder %v1926_v27, 0 }
  0x75   :  { %vm1931_vm15 = vcmp.lt.s32.totalorder %v1930_v28, 0  ;;  %v881_v29 = vsel %vm1927_vm14, 0, %v1926_v27 }
  0x76   :  { %v984_v30 = vsel %vm1931_vm15, 0, %v1930_v28  ;;  %v886_v32 = vsub.s32 4294967266, %v881_v29  ;;  %v882_v37 = vsub.s32 32, %v881_v29  ;;  %v883_v46 = vshll.u32 %v874_v19, %v881_v29  ;;  %v2229_v28 = vld [vmem:[%s3066_s7 + $0x24] ss:$16 sps:$4 sm:$0xff]  }
  0x77   :  { %v989_v33 = vsub.s32 4294967266, %v984_v30  ;;  %v985_v44 = vsub.s32 32, %v984_v30  ;;  %v986_v52 = vshll.u32 %v977_v20, %v984_v30  ;;  %v2232_v29 = vld [vmem:[%s3066_s7 + $0x2c] ss:$16 sps:$4 sm:$0xff]  }
  0x78   :  { %v887_v38 = vadd.s32 127, %v886_v32  ;;  %v884_v47 = vshrl.u32 %v866_v35, %v882_v37  ;;  %v2227_v32 = vld [vmem:[%s3066_s7 + $0x20] ss:$16 sps:$4 sm:$0xff]   ;;  %v2235_v35 = vld [vmem:[%s3066_s7 + $0x44] ss:$16 sps:$4 sm:$0xff]  }
  0x79   :  { %v990_v45 = vadd.s32 127, %v989_v33  ;;  %v987_v53 = vshrl.u32 %v969_v40, %v985_v44  ;;  %v2230_v33 = vld [vmem:[%s3066_s7 + $0x28] ss:$16 sps:$4 sm:$0xff]   ;;  %v2238_v37 = vld [vmem:[%s3066_s7 + $0x4c] ss:$16 sps:$4 sm:$0xff]   ;;  %v999_v40 = vsub.s32 4, %v2759_v17 }
  0x7a   :  { %v888_v48 = vshll.u32 %v887_v38, 23  ;;  %v885_v57 = vor.u32 %v884_v47, %v883_v46  ;;  %v896_v38 = vsub.s32 4, %v2757_v15  ;;  %v2233_v44 = vld [vmem:[%s3066_s7 + $0x40] ss:$16 sps:$4 sm:$0xff]   ;;  %v2241_v46 = vld [vmem:[%s3066_s7 + $0x64] ss:$16 sps:$4 sm:$0xff]  }
  0x7b   :  { %v991_v54 = vshll.u32 %v990_v45, 23  ;;  %v988_v58 = vor.u32 %v987_v53, %v986_v52  ;;  %v2236_v45 = vld [vmem:[%s3066_s7 + $0x48] ss:$16 sps:$4 sm:$0xff]   ;;  %v2239_v53 = vld [vmem:[%s3066_s7 + $0x60] ss:$16 sps:$4 sm:$0xff]  }
  0x7c   :  { %v889_v59 = vor.u32 4788187, %v888_v48  ;;  %v892_v5 = vcvt.s32.f32 %v885_v57  ;;  %v897_v47 = vsel %vm812_vm1, %v896_v38, %v2757_v15  ;;  %v1000_v48 = vsel %vm915_vm2, %v999_v40, %v2759_v17  ;;  %v2247_v17 = vld [vmem:[%s3066_s7 + $0x84] ss:$16 sps:$4 sm:$0xff]   ;;  %v2283_v38 = vld [vmem:[%s3068_s9 + $0x18] sm:$0xff]  }
  0x7d   :  { %v992_v62 = vor.u32 4788187, %v991_v54  ;;  %v995_v9 = vcvt.s32.f32 %v988_v58  ;;  %v2242_v54 = vld [vmem:[%s3066_s7 + $0x68] ss:$16 sps:$4 sm:$0xff]   ;;  %v1002_v15 = vsel %vm2780_vm4, 0, %v1000_v48 }
  0x7e   :  { %v890_v50 = vand.u32 2147483647, %v889_v59  ;;  %v2250_v59 = vld [vmem:[%s3066_s7 + $0x8c] ss:$16 sps:$4 sm:$0xff]   ;;  %v2248_v58 = vld [vmem:[%s3066_s7 + $0x88] ss:$16 sps:$4 sm:$0xff]  }
  0x7f   :  { %v993_v8 = vand.u32 2147483647, %v992_v62  ;;  %v2253_v62 = vld [vmem:[%s3066_s7 + $0xa4] ss:$16 sps:$4 sm:$0xff]   ;;  %v2284_v40 = vld [vmem:[%s3068_s9 + $0x98] sm:$0xff]   ;;  %v2290_v48 = vld [vmem:[%s3068_s9 + $0xe8] sm:$0xff]  }
  0x80   :  { %v893_v10 = vmul.f32 %v892_v5, %v890_v50  ;;  %v2251_v50 = vld [vmem:[%s3066_s7 + $0xa0] ss:$16 sps:$4 sm:$0xff]   ;;  %v2254_v5 = vld [vmem:[%s3066_s7 + $0xa8] ss:$16 sps:$4 sm:$0xff]  }
  0x81   :  { %v996_v11 = vmul.f32 %v995_v9, %v993_v8 }
  0x82   :  { %v894_v49 = vxor.u32 2147483648, %v893_v10 }
  0x83   :  { %v997_v13 = vxor.u32 2147483648, %v996_v11 }
  0x84   :  { %v895_v18 = vsel %vm812_vm1, %v894_v49, %v893_v10  ;;  %v2257_v49 = vld [vmem:[%s3066_s7 + $0xc0] ss:$16 sps:$4 sm:$0xff]  }
  0x85   :  { %v998_v23 = vsel %vm915_vm2, %v997_v13, %v996_v11  ;;  %v898_v25 = vsel %vm2772_vm3, %v2609_v12, %v895_v18  ;;  %v2260_v13 = vld [vmem:[%s3066_s7 + $0xc8] ss:$16 sps:$4 sm:$0xff]  }
  0x86   :  { %v1001_v30 = vsel %vm2780_vm4, %v2623_v16, %v998_v23  ;;  %2301 = vcosq.f32 %v898_v25  ;;  %v2269_v16 = vld [vmem:[%s3068_s9 + $0x40] sm:$0xff]  }
  0x87   :  { %2303 = vsinq.f32 %v898_v25  ;;  %v2272_v25 = vld [vmem:[%s3068_s9 + $0x80] sm:$0xff]  }
  0x88   :  { %2305 = vcosq.f32 %v1001_v30 }
  0x89   :  { %2307 = vsinq.f32 %v1001_v30  ;;  %v2278_v30 = vld [vmem:[%s3068_s9 + $0xd0] sm:$0xff]  }
  0x90   :  { %v2302_v52 = vpop.eup %2301 }
  0x91   :  { %v2304_v57 = vpop.eup %2303 }
  0xf5   :  { %v2014_v55 = vpop.f32.mrb[0].mxu0 }
  0xf6   :  { %v2015_v51 = vpop.f32.mrb[1].mxu0 }
  0xf7   :  { %v2016_v56 = vadd.f32 %v2015_v51, %v2014_v55  ;;  %v2017_v61 = vpop.f32.mrb[2].mxu0  ;;  %v2036_v63 = vpop.f32.mrb[0].mxu1  ;;  %v899_v55 = vsel %vm2772_vm3, 0, %v897_v47  ;;  %v2289_v47 = vld [vmem:[%s3068_s9 + $0x68] sm:$0xff]  }
  0xf8   :  { %v2018_v41 = vpop.f32.mrb[3].mxu0  ;;  %v2037_v0 = vpop.f32.mrb[1].mxu1  ;;  %v1006_v61 = vand.u32 3, %v1002_v15  ;;  %v2295_v15 = vld [vmem:[%s3068_s9 + $0x30] sm:$0xff]  }
  0xf9   :  { %v421_v3 = vadd.f32 %v2016_v56, %v1854_v60  ;;  %v2038_v4 = vadd.f32 %v2037_v0, %v2036_v63  ;;  %v2039_v43 = vpop.f32.mrb[2].mxu1  ;;  %v2306_v60 = vpop.eup %2305  ;;  %v903_v56 = vand.u32 3, %v899_v55  ;;  %v2245_v63 = vld [vmem:[%s3066_s7 + $0x80] ss:$16 sps:$4 sm:$0xff]   ;;  %v2256_v41 = vld [vmem:[%s3066_s7 + $0xac] ss:$16 sps:$4 sm:$0xff]  }
  0xfa   :  { %v2040_v6 = vpop.f32.mrb[3].mxu1  ;;  %v2308_v51 = vpop.eup %2307  ;;  %v906_v0 = vxor.u32 2147483648, %v2304_v57  ;;  %v1012_v43 = vxor.u32 2147483648, %v2306_v60  ;;  %vm1008_vm7 = vcmp.eq.s32.totalorder %v1006_v61, 0  ;;  %vm1011_vm8 = vcmp.eq.s32.totalorder %v1006_v61, 2  ;;  %v2294_v55 = vld [vmem:[%s3068_s9 + $0xf0] sm:$0xff]  }
  0xfb   :  { %v461_v7 = vadd.f32 %v2038_v4, %v421_v3  ;;  %v909_v3 = vxor.u32 2147483648, %v2302_v52  ;;  %v1009_v4 = vxor.u32 2147483648, %v2308_v51  ;;  %vm905_vm5 = vcmp.eq.s32.totalorder %v903_v56, 0  ;;  %v2259_v6 = vld [vmem:[%s3066_s7 + $0xc4] ss:$16 sps:$4 sm:$0xff]  }
  0xfc   :  { %vm908_vm6 = vcmp.eq.s32.totalorder %v903_v56, 2  ;;  %vm904_vm9 = vcmp.lt.s32.totalorder %v903_v56, 2  ;;  %vm1007_vm10 = vcmp.lt.s32.totalorder %v1006_v61, 2  ;;  %v907_v8 = vsel %vm905_vm5, %v2302_v52, %v906_v0  ;;  %v2291_v52 = vld [vmem:[%s3068_s9 + $0x28] sm:$0xff]  }
  0xfd   :  { %v910_v9 = vsel %vm908_vm6, %v909_v3, %v2304_v57  ;;  %v1010_v10 = vsel %vm1008_vm7, %v2306_v60, %v1009_v4  ;;  %v1013_v11 = vsel %vm1011_vm8, %v1012_v43, %v2308_v51  ;;  %v2296_v57 = vld [vmem:[%s3068_s9 + $0xb0] sm:$0xff]   ;;  %v2299_v60 = vld [vmem:[%s3068_s9 + $0x38] sm:$0xff]   ;;  %v2996_v56 = vsub.s32 0, %v2503_v34 }
  0xfe   :  { %v911_v18 = vsel %vm904_vm9, %v907_v8, %v910_v9  ;;  %v2300_v51 = vld [vmem:[%s3068_s9 + $0xb8] sm:$0xff]   ;;  %v2999_v61 = vsub.s32 2, %v2503_v34 }
  0xff   :  { %v912_v22 = vsel %vm902_vm11, nan, %v911_v18 }
 0x105   :  { %v500_v14 = vpop.f32.mrb[4].mxu0 }
 0x106   :  { %v501_v19 = vadd.f32 %v500_v14, %v461_v7  ;;  %v2104_v20 = vpop.f32.mrb[5].mxu0  ;;  %v2262_v7 = vld [vmem:[%s3066_s7 + $0xcc] ss:$16 sps:$4 sm:$0xff]   ;;  %v2265_v14 = vld [vmem:[%s3066_s7 + $0xe4] ss:$16 sps:$4 sm:$0xff]  }
 0x107   :  { %v503_v21 = vpop.f32.mrb[6].mxu0  ;;  %v2263_v20 = vld [vmem:[%s3066_s7 + $0xe0] ss:$16 sps:$4 sm:$0xff]  }
 0x108   :  { %v506_v24 = vmax.f32 %v501_v19, 0.0  ;;  %v2105_v42 = vpop.f32.mrb[7].mxu0  ;;  %v1014_v19 = vsel %vm1007_vm10, %v1010_v10, %v1013_v11  ;;  %v2266_v21 = vld [vmem:[%s3066_s7 + $0xe8] ss:$16 sps:$4 sm:$0xff]  }
 0x109   :  { %v1015_v23 = vsel %vm1005_vm12, nan, %v1014_v19  ;;  %v2271_v42 = vld [vmem:[%s3068_s9] sm:$0xff]  }
 0x10a   :  { %v507_v27 = vpack.c.bf16 %v506_v24, %v506_v24  ;;  %v1016_v12 = vpack.c.bf16 %v1015_v23, %v912_v22  ;;  %v2270_v24 = vld [vmem:[%s3068_s9 + $0xc0] sm:$0xff]  }
 0x10c   :  { %755 = vmatmul.mubr.bf16.vlgmr.msra.gmra.mrb[4].mxu1 %v507_v27  ;;  %796 = vmatmul.mubr.bf16.vlgmr.msra.gmra.mrb[8].mxu0 %v507_v27  ;;  %v2275_v27 = vld [vmem:[%s3068_s9 + $0x8] sm:$0xff]  }
 0x10d   :  { %1232 = vmatpush1.bf16.msra.mxu1 %v2221_v26  ;;  %1275 = vmatpush1.bf16.msra.mxu0 %v2224_v1  ;;  %v2273_v26 = vld [vmem:[%s3068_s9 + $0x48] sm:$0xff]  }
 0x10e   :  { %1233 = vmatprep.subr.bf16.mxu1 %v2229_v28  ;;  %1276 = vmatprep.subr.bf16.mxu0 %v2232_v29  ;;  %v2274_v1 = vld [vmem:[%s3068_s9 + $0xc8] sm:$0xff]   ;;  %v2277_v29 = vld [vmem:[%s3068_s9 + $0x50] sm:$0xff]  }
 0x10f   :  { %1263 = vmatprep.mubr.bf16.mxu1 %v2336_v31  ;;  %1306 = vmatprep.mubr.bf16.mxu0 %v2336_v31  ;;  %v2244_v31 = vld [vmem:[%s3066_s7 + $0x6c] ss:$16 sps:$4 sm:$0xff]  }
 0x110   :  { %v2276_v28 = vld [vmem:[%s3068_s9 + $0x88] sm:$0xff]  }
 0x111   :  { %1234 = vmatpush1.bf16.msra.mxu1 %v2227_v32  ;;  %1277 = vmatpush1.bf16.msra.mxu0 %v2230_v33  ;;  %v2279_v32 = vld [vmem:[%s3068_s9 + $0x10] sm:$0xff]  }
 0x112   :  { %1235 = vmatprep.subr.bf16.mxu1 %v2235_v35  ;;  %1278 = vmatprep.subr.bf16.mxu0 %v2238_v37  ;;  %v2280_v33 = vld [vmem:[%s3068_s9 + $0x90] sm:$0xff]   ;;  %v2281_v35 = vld [vmem:[%s3068_s9 + $0x58] sm:$0xff]  }
 0x113   :  { %v2282_v37 = vld [vmem:[%s3068_s9 + $0xd8] sm:$0xff]  }
 0x115   :  { %1236 = vmatpush1.bf16.msra.mxu1 %v2233_v44  ;;  %1279 = vmatpush1.bf16.msra.mxu0 %v2236_v45  ;;  %v2285_v44 = vld [vmem:[%s3068_s9 + $0x60] sm:$0xff]  }
 0x116   :  { %1237 = vmatprep.subr.bf16.mxu1 %v2241_v46  ;;  %1280 = vmatprep.subr.bf16.mxu0 %v2244_v31  ;;  %v2286_v45 = vld [vmem:[%s3068_s9 + $0xe0] sm:$0xff]  }
 0x117   :  { %v2287_v46 = vld [vmem:[%s3068_s9 + $0x20] sm:$0xff]  }
 0x118   :  { %v2288_v31 = vld [vmem:[%s3068_s9 + $0xa0] sm:$0xff]  }
 0x119   :  { %1238 = vmatpush1.bf16.msra.mxu1 %v2239_v53  ;;  %1281 = vmatpush1.bf16.msra.mxu0 %v2242_v54  ;;  %v2292_v53 = vld [vmem:[%s3068_s9 + $0xa8] sm:$0xff]   ;;  %v2293_v54 = vld [vmem:[%s3068_s9 + $0x70] sm:$0xff]  }
 0x11a   :  { %1239 = vmatprep.subr.bf16.mxu1 %v2247_v17  ;;  %1282 = vmatprep.subr.bf16.mxu0 %v2250_v59  ;;  %v2297_v17 = vld [vmem:[%s3068_s9 + $0x78] sm:$0xff]  }
 0x11b   :  { %v2298_v59 = vld [vmem:[%s3068_s9 + $0xf8] sm:$0xff]  }
 0x11d   :  { %1240 = vmatpush1.bf16.msra.mxu1 %v2245_v63  ;;  %1283 = vmatpush1.bf16.msra.mxu0 %v2248_v58  ;;  %v540_v63 = vld [vmem:[%s3065_s6] sm:$0xf]  ;;  %v3005_v58 = vsub.s32 1, %v2503_v34 }
 0x11e   :  { %1241 = vmatprep.subr.bf16.mxu1 %v2253_v62  ;;  %1284 = vmatprep.subr.bf16.mxu0 %v2256_v41  ;;  %v3008_v62 = vsub.s32 3, %v2503_v34  ;;  %v545_v41 = vrot.slane %v540_v63, %v2996_v56  ;;  %v553_v0 = vrot.slane %v540_v63, %v2999_v61 }
 0x11f   :  { %v549_v3 = vrot.slane %v540_v63, %v3005_v58 }
 0x120   :  { %v557_v4 = vrot.slane %v540_v63, %v3008_v62 }
 0x121   :  { %1242 = vmatpush1.bf16.msra.mxu1 %v2251_v50  ;;  %1285 = vmatpush1.bf16.msra.mxu0 %v2254_v5 }
 0x122   :  { %1243 = vmatprep.subr.bf16.mxu1 %v2259_v6  ;;  %1286 = vmatprep.subr.bf16.mxu0 %v2262_v7 }
 0x125   :  { %1244 = vmatpush1.bf16.msra.mxu1 %v2257_v49  ;;  %1287 = vmatpush1.bf16.msra.mxu0 %v2260_v13 }
 0x126   :  { %1245 = vmatprep.subr.bf16.mxu1 %v2265_v14  ;;  %1288 = vmatprep.subr.bf16.mxu0 %v2268_v2 }
 0x129   :  { %1246 = vmatpush1.bf16.msra.mxu1 %v2263_v20  ;;  %1289 = vmatpush1.bf16.msra.mxu0 %v2266_v21 }
 0x12a   :  { %2047 = vmatprep.subr.bf16.mxu1 %v2269_v16  ;;  %2069 = vmatprep.subr.bf16.mxu0 %v2270_v24  ;;  %v1049_v24 = vld [vmem:[%s3067_s8] sm:$0xf] }
 0x12c   :  { %1264 = vmatmul.mubr.bf16.vlgmr.msra.gmra.mrb[8].mxu1 %v1016_v12  ;;  %1307 = vmatmul.mubr.bf16.vlgmr.msra.gmra.mrb[12].mxu0 %v1016_v12 }
 0x12d   :  { %2048 = vmatpush3.bf16.msra.mxu1 %v2271_v42  ;;  %2070 = vmatpush3.bf16.msra.mxu0 %v2272_v25 }
 0x12e   :  { %2049 = vmatprep.subr.bf16.mxu1 %v2273_v26  ;;  %2071 = vmatprep.subr.bf16.mxu0 %v2274_v1  ;;  %v1054_v26 = vrot.slane %v1049_v24, %v2996_v56  ;;  %v1062_v1 = vrot.slane %v1049_v24, %v2999_v61 }
 0x131   :  { %2050 = vmatpush3.bf16.msra.mxu1 %v2275_v27  ;;  %2072 = vmatpush3.bf16.msra.mxu0 %v2276_v28  ;;  %v1058_v27 = vrot.slane %v1049_v24, %v3005_v58  ;;  %v1066_v28 = vrot.slane %v1049_v24, %v3008_v62 }
 0x132   :  { %2051 = vmatprep.subr.bf16.mxu1 %v2277_v29  ;;  %2073 = vmatprep.subr.bf16.mxu0 %v2278_v30 }
 0x135   :  { %2052 = vmatpush3.bf16.msra.mxu1 %v2279_v32  ;;  %2074 = vmatpush3.bf16.msra.mxu0 %v2280_v33 }
 0x136   :  { %2053 = vmatprep.subr.bf16.mxu1 %v2281_v35  ;;  %2075 = vmatprep.subr.bf16.mxu0 %v2282_v37 }
 0x139   :  { %2054 = vmatpush3.bf16.msra.mxu1 %v2283_v38  ;;  %2076 = vmatpush3.bf16.msra.mxu0 %v2284_v40 }
 0x13a   :  { %2055 = vmatprep.subr.bf16.mxu1 %v2285_v44  ;;  %2077 = vmatprep.subr.bf16.mxu0 %v2286_v45 }
 0x13d   :  { %2056 = vmatpush3.bf16.msra.mxu1 %v2287_v46  ;;  %2078 = vmatpush3.bf16.msra.mxu0 %v2288_v31 }
 0x13e   :  { %2057 = vmatprep.subr.bf16.mxu1 %v2289_v47  ;;  %2079 = vmatprep.subr.bf16.mxu0 %v2290_v48 }
 0x141   :  { %2058 = vmatpush3.bf16.msra.mxu1 %v2291_v52  ;;  %2080 = vmatpush3.bf16.msra.mxu0 %v2292_v53 }
 0x142   :  { %2059 = vmatprep.subr.bf16.mxu1 %v2293_v54  ;;  %2081 = vmatprep.subr.bf16.mxu0 %v2294_v55 }
 0x145   :  { %2060 = vmatpush3.bf16.msra.mxu1 %v2295_v15  ;;  %2082 = vmatpush3.bf16.msra.mxu0 %v2296_v57 }
 0x146   :  { %2061 = vmatprep.subr.bf16.mxu1 %v2297_v17  ;;  %2083 = vmatprep.subr.bf16.mxu0 %v2298_v59 }
 0x149   :  { %2062 = vmatpush3.bf16.msra.mxu1 %v2299_v60  ;;  %2084 = vmatpush3.bf16.msra.mxu0 %v2300_v51 }
 0x1df   :  { %v756_v43 = vpop.f32.mrb[4].mxu1  ;;  %v797_v50 = vpop.f32.mrb[8].mxu0 }
 0x1e0   :  { %v757_v5 = vadd.f32 %v756_v43, %v545_v41  ;;  %v798_v6 = vadd.f32 %v797_v50, %v553_v0  ;;  %v758_v7 = vpop.f32.mrb[5].mxu1  ;;  %v799_v8 = vpop.f32.mrb[9].mxu0 }
 0x1e1   :  { %v759_v9 = vadd.f32 %v758_v7, %v549_v3  ;;  %v800_v10 = vadd.f32 %v799_v8, %v557_v4  ;;  %v760_v11 = vpop.f32.mrb[6].mxu1  ;;  %v801_v49 = vpop.f32.mrb[10].mxu0 }
 0x1e2   :  { %v804_v34 = vmax.f32 %v757_v5, 0.0  ;;  %v806_v13 = vmax.f32 %v798_v6, 0.0  ;;  %v761_v14 = vpop.f32.mrb[7].mxu1  ;;  %v802_v2 = vpop.f32.mrb[11].mxu0 }
 0x1e3   :  { %v805_v18 = vmax.f32 %v759_v9, 0.0  ;;  %v807_v19 = vmax.f32 %v800_v10, 0.0  ;;  %v1964_v2 = vld [vmem:[%s3069_s10] ss:$0 sm:$0xff] }
 0x1e5   :  { %v1329_v20 = vcombine.low %v804_v34, %v805_v18  ;;  %v1330_v21 = vcombine.low %v806_v13, %v807_v19  ;;  %v2343_v34 = vmov 0.0|0.0  }
 0x1e6   :  { %2113 = vmatprep.subr.bf16.mxu1 %v2343_v34 }
 0x1e7   :  { %v1337_v22 = vrot.slane %v1329_v20, %v2513_v39  ;;  %v1344_v23 = vrot.slane %v1330_v21, %v2513_v39 }
 0x1e9   :  { %v1345_v12 = vcombine.low %v1337_v22, %v1344_v23  ;;  %v1346_v16 = vcombine.high %v1337_v22, %v1344_v23 }
 0x1eb   :  { %v1353_v42 = vrot.slane %v1345_v12, %v2513_v39  ;;  %v1360_v25 = vrot.slane %v1346_v16, %v2513_v39 }
 0x1ed   :  { %v1364_v30 = vrot.slane %v1353_v42, %v2996_v56  ;;  %v1372_v33 = vrot.slane %v1353_v42, %v2999_v61  ;;  %v1368_v35 = vrot.slane %v1353_v42, %v3005_v58  ;;  %v1376_v37 = vrot.slane %v1353_v42, %v3008_v62 }
 0x1ee   :  { %v1380_v45 = vrot.slane %v1360_v25, %v2996_v56  ;;  %v1388_v46 = vrot.slane %v1360_v25, %v2999_v61  ;;  %v1384_v53 = vrot.slane %v1360_v25, %v3005_v58  ;;  %v1392_v54 = vrot.slane %v1360_v25, %v3008_v62 }
 0x1ff   :  { %v1265_v29 = vpop.f32.mrb[8].mxu1  ;;  %v1308_v32 = vpop.f32.mrb[12].mxu0 }
 0x200   :  { %v1266_v38 = vadd.f32 %v1265_v29, %v1054_v26  ;;  %v1309_v39 = vadd.f32 %v1308_v32, %v1062_v1  ;;  %v1267_v40 = vpop.f32.mrb[9].mxu1  ;;  %v1310_v44 = vpop.f32.mrb[13].mxu0 }
 0x201   :  { %v1268_v31 = vadd.f32 %v1267_v40, %v1058_v27  ;;  %v1311_v47 = vadd.f32 %v1310_v44, %v1066_v28  ;;  %v1269_v48 = vpop.f32.mrb[10].mxu1  ;;  %v1312_v52 = vpop.f32.mrb[14].mxu0 }
 0x202   :  { %v1317_v55 = vmax.f32 %v1266_v38, 0.0  ;;  %v1319_v15 = vmax.f32 %v1309_v39, 0.0  ;;  %v1270_v57 = vadd.f32 %v1269_v48, %v1054_v26  ;;  %v1313_v17 = vadd.f32 %v1312_v52, %v1062_v1  ;;  %v1271_v59 = vpop.f32.mrb[11].mxu1  ;;  %v1314_v60 = vpop.f32.mrb[15].mxu0 }
 0x203   :  { %v1318_v51 = vmax.f32 %v1268_v31, 0.0  ;;  %v1320_v63 = vmax.f32 %v1311_v47, 0.0  ;;  %v1272_v41 = vadd.f32 %v1271_v59, %v1058_v27  ;;  %v1315_v56 = vadd.f32 %v1314_v60, %v1066_v28  ;;  %v1760_v28 = vld [vmem:[%s3061_s2] sm:$0x3] }
 0x204   :  { %v1401_v0 = vmul.f32 %v1364_v30, %v1317_v55  ;;  %v1403_v61 = vmul.f32 %v1372_v33, %v1319_v15  ;;  %v1321_v3 = vmax.f32 %v1270_v57, 0.0  ;;  %v1323_v4 = vmax.f32 %v1313_v17, 0.0 }
 0x205   :  { %v1402_v43 = vmul.f32 %v1368_v35, %v1318_v51  ;;  %v1404_v50 = vmul.f32 %v1376_v37, %v1320_v63  ;;  %v1322_v5 = vmax.f32 %v1272_v41, 0.0  ;;  %v1324_v58 = vmax.f32 %v1315_v56, 0.0 }
 0x206   :  { %v1405_v6 = vmul.f32 %v1380_v45, %v1321_v3  ;;  %v1407_v62 = vmul.f32 %v1388_v46, %v1323_v4 }
 0x207   :  { %v1406_v7 = vmul.f32 %v1384_v53, %v1322_v5  ;;  %v1408_v8 = vmul.f32 %v1392_v54, %v1324_v58 }
 0x208   :  { %v1409_v9 = vpack.c.bf16 %v1405_v6, %v1401_v0  ;;  %v1411_v10 = vpack.c.bf16 %v1407_v62, %v1403_v61 }
 0x209   :  { %v1410_v11 = vpack.c.bf16 %v1406_v7, %v1402_v43  ;;  %v1412_v49 = vpack.c.bf16 %v1408_v8, %v1404_v50 }
 0x20b   :  { %1708 = vmatprep.mubr.bf16.mxu1 %v1410_v11  ;;  %1749 = vmatprep.mubr.bf16.mxu0 %v1412_v49 }
 0x20c   :  { %1709 = vmatmul.mubr.bf16.vlgmr.msra.gmra.mrb[12].mxu1 %v1409_v9  ;;  %1750 = vmatmul.mubr.bf16.vlgmr.msra.gmra.mrb[16].mxu0 %v1411_v10 }
 0x20d   :  { %2110 = vmatprep.mubr.msk.f32.mxu1 %vm2335_vm0, %v2334_v36  ;;  %vm1761_vm0 = vcmask 130048  }
 0x2df   :  { %v2063_v13 = vpop.f32.mrb[12].mxu1  ;;  %v2085_v14 = vpop.f32.mrb[16].mxu0 }
 0x2e0   :  { %v2064_v18 = vpop.f32.mrb[13].mxu1  ;;  %v2086_v19 = vpop.f32.mrb[17].mxu0 }
 0x2e1   :  { %v2065_v20 = vadd.f32 %v2064_v18, %v2063_v13  ;;  %v2087_v21 = vadd.f32 %v2086_v19, %v2085_v14  ;;  %v2066_v22 = vpop.f32.mrb[14].mxu1  ;;  %v2088_v23 = vpop.f32.mrb[18].mxu0 }
 0x2e2   :  { %v2067_v12 = vpop.f32.mrb[15].mxu1  ;;  %v2089_v16 = vpop.f32.mrb[19].mxu0 }
 0x2e3   :  { %v1711_v24 = vadd.f32 %v2065_v20, %v1964_v2  ;;  %v2068_v42 = vadd.f32 %v2067_v12, %v2066_v22  ;;  %v2090_v25 = vadd.f32 %v2089_v16, %v2088_v23 }
 0x2e5   :  { %v1752_v36 = vadd.f32 %v2087_v21, %v1711_v24  ;;  %v1714_v26 = vadd.f32 %v2068_v42, %v1964_v2 }
 0x2e7   :  { %1758 = vst [vmem:[%s3070_s11] sm:$0xff] %v1752_v36  ;;  %v1755_v1 = vadd.f32 %v2090_v25, %v1714_v26 }
 0x2e9   :  { %1759 = vst [vmem:[%s3070_s11 + $0x8] sm:$0xff] %v1755_v1  ;;  %v2114_v27 = vpack.c.bf16 %v1755_v1, %v1752_v36 }
 0x2eb   :  { %2115 = vmatpush3.bf16.msra.mxu1 %v2114_v27 }
 0x2ee   :  { %2111 = vmatmul.mubr.msk.f32.vlgmr.msra.gmra.mrb[16].mxu1 %vm1761_vm0, %v1760_v28 }
 0x3c1   :  { %v1831_v29 = vpop.f32.mrb[16].mxu1 }
 0x3c2   :  { %1835 = vst [vmem:[#allocation2] sm:$0x3] %v1831_v29  ;;  %v2112_v30 = vpop.f32.mrb[17].mxu1 }
 0x3c3   :  { %2320 = shalt.err (!%p2317_p4)
}
 0x3c4   :  { %s2321_s30 = scalar_lea.hbm %s3071_s12, 32 }
 0x3c5   :  { %p2322_p5 = scmp.ne.s32.totalorder %s3071_s12, %s2321_s30  ;;  %p2325_p6 = scmp.lt.u32.totalorder %s2321_s30, %s3071_s12 }
 0x3c7   :  { %p2327_p7 = pnand %p2325_p6, %p2322_p5 }
 0x3c9   :  { %2330 = shalt.err (!%p2327_p7)
}
 0x3ca   :  { %1847 = dma.vmem_to_hbm [thread:$0]  %s1845_s27, 32, %s3071_s12, [#allocation3]  }
 0x3cb   :  { %2331 = dma.done.wait [#allocation3], 32  }
 0x3cc   :  { %2332 = vsyncadd [#allocation3], 4294967264 }
 0x3cd   :  { %1853 = vsyncpa [#allocation3], 1 }

</bundles_post_ra>
